<compile_context>
chip_gen: v7x
topology: tpu7x:2x2x1
jax: 0.10.0
libtpu: 0.0.40
codegen_flags: <defaults>
</compile_context>

<pallas_src>
import functools
import math

import jax
import jax.numpy as jnp
from jax import lax
from jax.experimental import pallas as pl
from jax.experimental.pallas import tpu as pltpu

EPS = 1e-5  # PyTorch LayerNorm default


# ----------------------------------------------------------------------------
# Tiling helpers (no padding: tiles are chosen as divisors of the true extents)
# ----------------------------------------------------------------------------
def _batch_tile(B, L, row_cap=512):
    """Largest tb dividing B with tb*L token rows <= row_cap (>= 1)."""
    tb = max(1, min(B, row_cap // max(L, 1)))
    while B % tb:
        tb -= 1
    return max(tb, 1)


def _col_tile(N, col_cap=1024):
    """Output-column tile: full N if small, else largest multiple of 128 dividing N."""
    if N <= col_cap:
        return N
    t = (col_cap // 128) * 128
    while t >= 128:
        if N % t == 0:
            return t
        t -= 128
    return N


# ----------------------------------------------------------------------------
# Kernel 1: LayerNorm + matmul + bias (+ optional QuickGELU), fused, N-tiled
# ----------------------------------------------------------------------------
def _ln_matmul_kernel(x_ref, g_ref, b_ref, w_ref, wb_ref, o_ref, *, act):
    tb, L, D = x_ref.shape
    x = x_ref[...].astype(jnp.float32)                       # (tb, L, D) f32 LN math
    mu = jnp.mean(x, axis=-1, keepdims=True)
    xc = x - mu
    var = jnp.mean(xc * xc, axis=-1, keepdims=True)
    xn = xc * lax.rsqrt(var + EPS)
    xn = xn * g_ref[...] + b_ref[...]                        # (1, D) broadcast
    xn = xn.reshape(tb * L, D).astype(jnp.bfloat16)          # bf16 MXU operand
    y = jnp.dot(xn, w_ref[...], preferred_element_type=jnp.float32)
    y = y + wb_ref[...].astype(jnp.float32)                  # (1, tn) broadcast
    if act == "quick_gelu":
        y = y * jax.nn.sigmoid(1.702 * y)
    o_ref[...] = y.reshape(tb, L, y.shape[-1]).astype(o_ref.dtype)


def ln_matmul(x3, gamma, beta, w, wb, *, act=None, out_dtype=None,
              row_cap=512, col_cap=1024):
    # x3: (B, L, D) batch-major activations; w: (D, N); returns (B, L, N).
    B, L, D = x3.shape
    N = w.shape[1]
    out_dtype = out_dtype or x3.dtype
    tb = _batch_tile(B, L, row_cap)
    tn = _col_tile(N, col_cap)
    return pl.pallas_call(
        functools.partial(_ln_matmul_kernel, act=act),
        out_shape=jax.ShapeDtypeStruct((B, L, N), out_dtype),
        grid=(B // tb, N // tn),                             # N axis innermost -> x block revisited
        in_specs=[
            pl.BlockSpec((tb, L, D), lambda i, j: (i, 0, 0)),
            pl.BlockSpec((1, D), lambda i, j: (0, 0)),
            pl.BlockSpec((1, D), lambda i, j: (0, 0)),
            pl.BlockSpec((D, tn), lambda i, j: (0, j)),
            pl.BlockSpec((1, tn), lambda i, j: (0, j)),
        ],
        out_specs=pl.BlockSpec((tb, L, tn), lambda i, j: (i, 0, j)),
        compiler_params=pltpu.CompilerParams(
            dimension_semantics=("parallel", "parallel")),
    )(x3,
      gamma.reshape(1, D).astype(jnp.float32),
      beta.reshape(1, D).astype(jnp.float32),
      w.astype(jnp.bfloat16),
      wb.reshape(1, N).astype(jnp.float32))


# ----------------------------------------------------------------------------
# Kernel 2: softmax attention, one batch per grid step, all heads in-kernel
#   reads the (L, 3D) QKV slab directly, writes a lane-dense (L, D) block
# ----------------------------------------------------------------------------
def _attn_kernel(qkv_ref, *rest, n_head, scale, has_mask):
    if has_mask:
        mask_ref, o_ref = rest
        mask = mask_ref[...].astype(jnp.float32)
    else:
        (o_ref,) = rest
        mask = None
    L, threeD = qkv_ref.shape
    D = threeD // 3
    hd = D // n_head
    # TODO(synk): flash-style KV-block tiling for long L (see module docstring).
    for h in range(n_head):                                   # unrolled static loop
        qh = qkv_ref[:, h * hd:(h + 1) * hd].astype(jnp.bfloat16)
        kh = qkv_ref[:, D + h * hd:D + (h + 1) * hd].astype(jnp.bfloat16)
        vh = qkv_ref[:, 2 * D + h * hd:2 * D + (h + 1) * hd].astype(jnp.bfloat16)
        s = lax.dot_general(qh, kh, (((1,), (1,)), ((), ())),
                            preferred_element_type=jnp.float32) * scale
        if mask is not None:
            s = s + mask
        m = jnp.max(s, axis=-1, keepdims=True)
        p = jnp.exp(s - m)
        l = jnp.sum(p, axis=-1, keepdims=True)
        o = jnp.dot(p.astype(jnp.bfloat16), vh,
                    preferred_element_type=jnp.float32)
        o = o * pl.reciprocal(l, approx=True)                 # EUP, not VALU
        o_ref[:, h * hd:(h + 1) * hd] = o.astype(o_ref.dtype)


def mha_attention(qkv, attn_mask, *, n_head, scale, out_dtype):
    # qkv: (B, L, 3D) (bf16); returns (B, L, D) head-major-concatenated output.
    B, L, threeD = qkv.shape
    D = threeD // 3
    has_mask = attn_mask is not None
    in_specs = [pl.BlockSpec((None, L, threeD), lambda b: (b, 0, 0))]
    args = [qkv]
    if has_mask:
        in_specs.append(pl.BlockSpec((L, L), lambda b: (0, 0)))
        args.append(attn_mask.astype(jnp.float32))
    return pl.pallas_call(
        functools.partial(_attn_kernel, n_head=n_head, scale=scale,
                          has_mask=has_mask),
        out_shape=jax.ShapeDtypeStruct((B, L, D), out_dtype),
        grid=(B,),
        in_specs=in_specs,
        out_specs=pl.BlockSpec((None, L, D), lambda b: (b, 0, 0)),
        compiler_params=pltpu.CompilerParams(dimension_semantics=("parallel",)),
    )(*args)


# ----------------------------------------------------------------------------
# Kernel 3: matmul + bias + residual add, fused, N-tiled, residual aliased out
# ----------------------------------------------------------------------------
def _matmul_bias_res_kernel(h_ref, w_ref, b_ref, r_ref, o_ref):
    tb, L, K = h_ref.shape
    h2 = h_ref[...].reshape(tb * L, K).astype(jnp.bfloat16)
    y = jnp.dot(h2, w_ref[...], preferred_element_type=jnp.float32)
    y = (y.reshape(tb, L, y.shape[-1])
         + b_ref[...].astype(jnp.float32)
         + r_ref[...].astype(jnp.float32))
    o_ref[...] = y.astype(o_ref.dtype)


def matmul_bias_residual(h3, w, b, r3, *, row_cap=512, col_cap=1024):
    # h3: (B, L, K); w: (K, N); r3 (residual): (B, L, N); returns (B, L, N).
    B, L, K = h3.shape
    N = w.shape[1]
    tb = _batch_tile(B, L, row_cap)
    tn = _col_tile(N, col_cap)
    return pl.pallas_call(
        _matmul_bias_res_kernel,
        out_shape=jax.ShapeDtypeStruct((B, L, N), r3.dtype),
        grid=(B // tb, N // tn),
        in_specs=[
            pl.BlockSpec((tb, L, K), lambda i, j: (i, 0, 0)),
            pl.BlockSpec((K, tn), lambda i, j: (0, j)),
            pl.BlockSpec((1, tn), lambda i, j: (0, j)),
            pl.BlockSpec((tb, L, tn), lambda i, j: (i, 0, j)),
        ],
        out_specs=pl.BlockSpec((tb, L, tn), lambda i, j: (i, 0, j)),
        input_output_aliases={3: 0},                         # residual buffer reused for output
        compiler_params=pltpu.CompilerParams(
            dimension_semantics=("parallel", "parallel")),
    )(h3, w.astype(jnp.bfloat16), b.reshape(1, N).astype(jnp.float32), r3)


# ----------------------------------------------------------------------------
# ResidualAttentionBlock forward (wrapper / glue)
# ----------------------------------------------------------------------------
def residual_attention_block(x, params, *, n_head, attn_mask=None):
    # x: (L, B, D)  -- seq-first, as in nn.MultiheadAttention default
    L, B, D = x.shape
    assert D % n_head == 0
    hd = D // n_head

    # Single layout change to batch-major so every kernel sees per-batch
    # contiguous token rows; no head split/merge or q/k/v slicing in the wrapper.
    xb = jnp.transpose(x, (1, 0, 2))                          # (B, L, D)

    # ---- x = x + out_proj(attention(ln_1(x))) ----
    qkv = ln_matmul(xb, params["ln1_g"], params["ln1_b"],
                    params["w_qkv"], params["b_qkv"],
                    act=None, out_dtype=jnp.bfloat16)         # (B, L, 3D) bf16
    attn = mha_attention(qkv, attn_mask, n_head=n_head,
                         scale=1.0 / math.sqrt(hd),
                         out_dtype=jnp.bfloat16)              # (B, L, D) bf16
    xb = matmul_bias_residual(attn, params["w_out"], params["b_out"], xb)

    # ---- x = x + c_proj(QuickGELU(c_fc(ln_2(x)))) ----
    h = ln_matmul(xb, params["ln2_g"], params["ln2_b"],
                  params["w_fc"], params["b_fc"],
                  act="quick_gelu", out_dtype=jnp.bfloat16)   # (B, L, 4D) bf16
    xb = matmul_bias_residual(h, params["w_proj"], params["b_proj"], xb)

    return jnp.transpose(xb, (1, 0, 2))                       # back to (L, B, D)


# ----------------------------------------------------------------------------
# Pure-JAX reference (mirrors the PyTorch module; weights upcast to f32)
# ----------------------------------------------------------------------------
def ref_forward(x, params, *, n_head, attn_mask=None):
    L, B, D = x.shape
    hd = D // n_head
    f32 = lambda a: a.astype(jnp.float32)

    def ln(t, g, b):
        t = t.astype(jnp.float32)
        mu = t.mean(-1, keepdims=True)
        var = ((t - mu) ** 2).mean(-1, keepdims=True)
        return (t - mu) / jnp.sqrt(var + EPS) * g + b

    xa = ln(x, params["ln1_g"], params["ln1_b"])
    qkv = xa @ f32(params["w_qkv"]) + params["b_qkv"]
    q, k, v = jnp.split(qkv, 3, axis=-1)

    def heads(t):  # (L, B, D) -> (B, H, L, hd)
        return t.reshape(L, B, n_head, hd).transpose(1, 2, 0, 3)

    qh, kh, vh = heads(q), heads(k), heads(v)
    s = jnp.einsum("bhqd,bhkd->bhqk", qh, kh) / math.sqrt(hd)
    if attn_mask is not None:
        s = s + attn_mask
    p = jax.nn.softmax(s, axis=-1)
    o = jnp.einsum("bhqk,bhkd->bhqd", p, vh)
    o = o.transpose(2, 0, 1, 3).reshape(L, B, D)
    x = x + o @ f32(params["w_out"]) + params["b_out"]

    xb = ln(x, params["ln2_g"], params["ln2_b"])
    h = xb @ f32(params["w_fc"]) + params["b_fc"]
    h = h * jax.nn.sigmoid(1.702 * h)
    x = x + h @ f32(params["w_proj"]) + params["b_proj"]
    return x


# ----------------------------------------------------------------------------
# Deterministic parameter init (weights pre-transposed for x @ W, stored bf16)
# ----------------------------------------------------------------------------
def init_params(key, d_model):
    ks = jax.random.split(key, 8)
    std = 0.05
    bf16 = jnp.bfloat16

    def ln_params(c, seed):
        i = jnp.arange(c, dtype=jnp.float32)
        return 1.0 + 0.05 * jnp.cos(i + seed), 0.02 * jnp.sin(i + seed)

    g1, b1 = ln_params(d_model, 1.0)
    g2, b2 = ln_params(d_model, 2.0)
    return dict(
        ln1_g=g1, ln1_b=b1, ln2_g=g2, ln2_b=b2,
        # Projection weights stored bf16 (halves DMA bytes / VMEM footprint);
        # biases and LN affine params stay f32.
        w_qkv=(std * jax.random.normal(ks[0], (d_model, 3 * d_model), jnp.float32)).astype(bf16),
        b_qkv=0.01 * jax.random.normal(ks[1], (3 * d_model,), jnp.float32),
        w_out=(std * jax.random.normal(ks[2], (d_model, d_model), jnp.float32)).astype(bf16),
        b_out=0.01 * jax.random.normal(ks[3], (d_model,), jnp.float32),
        w_fc=(std * jax.random.normal(ks[4], (d_model, 4 * d_model), jnp.float32)).astype(bf16),
        b_fc=0.01 * jax.random.normal(ks[5], (4 * d_model,), jnp.float32),
        w_proj=(std * jax.random.normal(ks[6], (4 * d_model, d_model), jnp.float32)).astype(bf16),
        b_proj=0.01 * jax.random.normal(ks[7], (d_model,), jnp.float32),
    )


if __name__ == "__main__":
    L, B, D, H = 8, 2, 32, 4  # seq, batch, d_model, n_head

    key = jax.random.PRNGKey(0)
    kx, kp = jax.random.split(key)
    x = jax.random.normal(kx, (L, B, D), jnp.float32)
    params = init_params(kp, D)

    # CLIP-style causal additive mask (large negative above the diagonal)
    attn_mask = jnp.triu(jnp.full((L, L), -1e9, jnp.float32), k=1)

    fwd = jax.jit(functools.partial(residual_attention_block, n_head=H))
    out = jax.block_until_ready(fwd(x, params, attn_mask=attn_mask))

    assert out.shape == (L, B, D), out.shape

    ref = ref_forward(x, params, n_head=H, attn_mask=attn_mask)
    err = float(jnp.max(jnp.abs(out - ref)))
    assert err < 2e-2, f"max abs error {err}"

    print("KERNEL_OK")
</pallas_src>

<mosaic_0001>
module attributes {stable_mosaic.version = 11 : i64} {
  func.func @_matmul_bias_res_kernel(%arg0: i32, %arg1: i32, %arg2: memref<2x8x32xbf16, #tpu.memory_space<vmem>>, %arg3: memref<32x32xbf16, #tpu.memory_space<vmem>>, %arg4: memref<1x32xf32, #tpu.memory_space<vmem>>, %arg5: memref<2x8x32xf32, #tpu.memory_space<vmem>>, %arg6: memref<2x8x32xf32, #tpu.memory_space<vmem>>) attributes {dimension_semantics = [#tpu.dimension_semantics<parallel>, #tpu.dimension_semantics<parallel>], iteration_bounds = array<i64: 1, 1>, scalar_prefetch = 0 : i64, scratch_operands = 0 : i64, tpu.core_type = #tpu.core_type<tc>, window_params = [{transform_indices = @transform_0, window_bounds = array<i64: 2, 8, 32>}, {transform_indices = @transform_1, window_bounds = array<i64: 32, 32>}, {transform_indices = @transform_2, window_bounds = array<i64: 1, 32>}, {transform_indices = @transform_3, window_bounds = array<i64: 2, 8, 32>}, {transform_indices = @transform_4, window_bounds = array<i64: 2, 8, 32>}]} {
    %c0 = arith.constant 0 : index
    %c0_0 = arith.constant 0 : index
    %c0_1 = arith.constant 0 : index
    %0 = vector.load %arg2[%c0, %c0_0, %c0_1] : memref<2x8x32xbf16, #tpu.memory_space<vmem>>, vector<2x8x32xbf16>
    %1 = vector.shape_cast %0 : vector<2x8x32xbf16> to vector<16x32xbf16>
    %c0_2 = arith.constant 0 : index
    %c0_3 = arith.constant 0 : index
    %2 = vector.load %arg3[%c0_2, %c0_3] : memref<32x32xbf16, #tpu.memory_space<vmem>>, vector<32x32xbf16>
    %cst = arith.constant dense<0.000000e+00> : vector<16x32xf32>
    %3 = tpu.matmul %1, %2, %cst {dimension_numbers = #tpu.dot_dimension_numbers<[1], [0], [0], [1], [0, 0, 1, 1], [], []>} : vector<16x32xbf16>, vector<32x32xbf16>, vector<16x32xf32> -> vector<16x32xf32>
    %4 = vector.shape_cast %3 : vector<16x32xf32> to vector<2x8x32xf32>
    %c0_4 = arith.constant 0 : index
    %c0_5 = arith.constant 0 : index
    %5 = vector.load %arg4[%c0_4, %c0_5] : memref<1x32xf32, #tpu.memory_space<vmem>>, vector<1x32xf32>
    %6 = vector.shape_cast %5 : vector<1x32xf32> to vector<1x1x32xf32>
    %7 = vector.broadcast %6 : vector<1x1x32xf32> to vector<2x8x32xf32>
    %8 = arith.addf %4, %7 : vector<2x8x32xf32>
    %c0_6 = arith.constant 0 : index
    %c0_7 = arith.constant 0 : index
    %c0_8 = arith.constant 0 : index
    %9 = vector.load %arg5[%c0_6, %c0_7, %c0_8] : memref<2x8x32xf32, #tpu.memory_space<vmem>>, vector<2x8x32xf32>
    %10 = arith.addf %8, %9 : vector<2x8x32xf32>
    %c0_9 = arith.constant 0 : index
    %c0_10 = arith.constant 0 : index
    %c0_11 = arith.constant 0 : index
    %11 = vector.load %arg6[%c0_9, %c0_10, %c0_11] : memref<2x8x32xf32, #tpu.memory_space<vmem>>, vector<2x8x32xf32>
    tpu.vector_store %arg6[%c0_9, %c0_10, %c0_11], %10 {strides = array<i32>} : memref<2x8x32xf32, #tpu.memory_space<vmem>>, vector<2x8x32xf32>,
    return
  }
  func.func @transform_0(%arg0: i32, %arg1: i32) -> (i32, i32, i32) {
    %c0_i32 = arith.constant 0 : i32
    %c0_i32_0 = arith.constant 0 : i32
    %c0_i32_1 = arith.constant 0 : i32
    return %arg0, %c0_i32, %c0_i32_0 : i32, i32, i32
  }
  func.func @transform_1(%arg0: i32, %arg1: i32) -> (i32, i32) {
    %c0_i32 = arith.constant 0 : i32
    %c0_i32_0 = arith.constant 0 : i32
    return %c0_i32, %arg1 : i32, i32
  }
  func.func @transform_2(%arg0: i32, %arg1: i32) -> (i32, i32) {
    %c0_i32 = arith.constant 0 : i32
    %c0_i32_0 = arith.constant 0 : i32
    return %c0_i32, %arg1 : i32, i32
  }
  func.func @transform_3(%arg0: i32, %arg1: i32) -> (i32, i32, i32) {
    %c0_i32 = arith.constant 0 : i32
    %c0_i32_0 = arith.constant 0 : i32
    return %arg0, %c0_i32, %arg1 : i32, i32, i32
  }
  func.func @transform_4(%arg0: i32, %arg1: i32) -> (i32, i32, i32) {
    %c0_i32 = arith.constant 0 : i32
    %c0_i32_0 = arith.constant 0 : i32
    return %arg0, %c0_i32, %arg1 : i32, i32, i32
  }
}

module attributes {stable_mosaic.version = 11 : i64} {
  func.func @_attn_kernel(%arg0: i32, %arg1: memref<1x8x96xbf16, #tpu.memory_space<vmem>>, %arg2: memref<8x8xf32, #tpu.memory_space<vmem>>, %arg3: memref<1x8x32xbf16, #tpu.memory_space<vmem>>) attributes {dimension_semantics = [#tpu.dimension_semantics<parallel>], iteration_bounds = array<i64: 2>, scalar_prefetch = 0 : i64, scratch_operands = 0 : i64, tpu.core_type = #tpu.core_type<tc>, window_params = [{transform_indices = @transform_0, window_bounds = array<i64: 1, 8, 96>}, {pipeline_mode = #tpu.pipeline_mode<synchronous>, transform_indices = @transform_1, window_bounds = array<i64: 8, 8>}, {transform_indices = @transform_2, window_bounds = array<i64: 1, 8, 32>}]} {
    %c0 = arith.constant 0 : index
    %c0_0 = arith.constant 0 : index
    %0 = vector.load %arg2[%c0, %c0_0] : memref<8x8xf32, #tpu.memory_space<vmem>>, vector<8x8xf32>
    %c0_1 = arith.constant 0 : index
    %c0_2 = arith.constant 0 : index
    %c0_3 = arith.constant 0 : index
    %1 = vector.load %arg1[%c0_1, %c0_2, %c0_3] : memref<1x8x96xbf16, #tpu.memory_space<vmem>>, vector<1x8x8xbf16>
    %2 = vector.shape_cast %1 : vector<1x8x8xbf16> to vector<8x8xbf16>
    %c0_4 = arith.constant 0 : index
    %c0_5 = arith.constant 0 : index
    %c32 = arith.constant 32 : index
    %3 = vector.load %arg1[%c0_4, %c0_5, %c32] : memref<1x8x96xbf16, #tpu.memory_space<vmem>>, vector<1x8x8xbf16>
    %4 = vector.shape_cast %3 : vector<1x8x8xbf16> to vector<8x8xbf16>
    %c0_6 = arith.constant 0 : index
    %c0_7 = arith.constant 0 : index
    %c64 = arith.constant 64 : index
    %5 = vector.load %arg1[%c0_6, %c0_7, %c64] : memref<1x8x96xbf16, #tpu.memory_space<vmem>>, vector<1x8x8xbf16>
    %6 = vector.shape_cast %5 : vector<1x8x8xbf16> to vector<8x8xbf16>
    %cst = arith.constant dense<0.000000e+00> : vector<8x8xf32>
    %7 = tpu.matmul %2, %4, %cst {dimension_numbers = #tpu.dot_dimension_numbers<[1], [1], [0], [0], [0, 0, 1, 0], [], []>} : vector<8x8xbf16>, vector<8x8xbf16>, vector<8x8xf32> -> vector<8x8xf32>
    %cst_8 = arith.constant 0.353553385 : f32
    %8 = vector.broadcast %cst_8 : f32 to vector<8x8xf32>
    %9 = arith.mulf %7, %8 : vector<8x8xf32>
    %10 = arith.addf %9, %0 : vector<8x8xf32>
    %cst_9 = arith.constant dense<0xFF800000> : vector<8xf32>
    %11 = vector.multi_reduction <maximumf>, %10, %cst_9 [1] : vector<8x8xf32> to vector<8xf32>
    %12 = vector.shape_cast %11 : vector<8xf32> to vector<8x1xf32>
    %13 = vector.broadcast %12 : vector<8x1xf32> to vector<8x8xf32>
    %14 = arith.subf %10, %13 : vector<8x8xf32>
    %15 = math.exp %14 : vector<8x8xf32>
    %cst_10 = arith.constant dense<0.000000e+00> : vector<8xf32>
    %16 = vector.multi_reduction <add>, %15, %cst_10 [1] : vector<8x8xf32> to vector<8xf32>
    %17 = vector.shape_cast %16 : vector<8xf32> to vector<8x1xf32>
    %18 = arith.truncf %15 : vector<8x8xf32> to vector<8x8xbf16>
    %cst_11 = arith.constant dense<0.000000e+00> : vector<8x8xf32>
    %19 = tpu.matmul %18, %6, %cst_11 {dimension_numbers = #tpu.dot_dimension_numbers<[1], [0], [0], [1], [0, 0, 1, 1], [], []>} : vector<8x8xbf16>, vector<8x8xbf16>, vector<8x8xf32> -> vector<8x8xf32>
    %20 = tpu.reciprocal %17 {approx = true} : vector<8x1xf32> -> vector<8x1xf32>
    %21 = vector.broadcast %20 : vector<8x1xf32> to vector<8x8xf32>
    %22 = arith.mulf %19, %21 : vector<8x8xf32>
    %23 = arith.truncf %22 : vector<8x8xf32> to vector<8x8xbf16>
    %c0_12 = arith.constant 0 : index
    %c0_13 = arith.constant 0 : index
    %c0_14 = arith.constant 0 : index
    %24 = vector.load %arg3[%c0_12, %c0_13, %c0_14] : memref<1x8x32xbf16, #tpu.memory_space<vmem>>, vector<1x8x8xbf16>
    %25 = vector.shape_cast %24 : vector<1x8x8xbf16> to vector<8x8xbf16>
    %26 = vector.shape_cast %23 : vector<8x8xbf16> to vector<1x8x8xbf16>
    tpu.vector_store %arg3[%c0_12, %c0_13, %c0_14], %26 {strides = array<i32>} : memref<1x8x32xbf16, #tpu.memory_space<vmem>>, vector<1x8x8xbf16>,
    %c0_15 = arith.constant 0 : index
    %c0_16 = arith.constant 0 : index
    %c8 = arith.constant 8 : index
    %27 = vector.load %arg1[%c0_15, %c0_16, %c8] : memref<1x8x96xbf16, #tpu.memory_space<vmem>>, vector<1x8x8xbf16>
    %28 = vector.shape_cast %27 : vector<1x8x8xbf16> to vector<8x8xbf16>
    %c0_17 = arith.constant 0 : index
    %c0_18 = arith.constant 0 : index
    %c40 = arith.constant 40 : index
    %29 = vector.load %arg1[%c0_17, %c0_18, %c40] : memref<1x8x96xbf16, #tpu.memory_space<vmem>>, vector<1x8x8xbf16>
    %30 = vector.shape_cast %29 : vector<1x8x8xbf16> to vector<8x8xbf16>
    %c0_19 = arith.constant 0 : index
    %c0_20 = arith.constant 0 : index
    %c72 = arith.constant 72 : index
    %31 = vector.load %arg1[%c0_19, %c0_20, %c72] : memref<1x8x96xbf16, #tpu.memory_space<vmem>>, vector<1x8x8xbf16>
    %32 = vector.shape_cast %31 : vector<1x8x8xbf16> to vector<8x8xbf16>
    %cst_21 = arith.constant dense<0.000000e+00> : vector<8x8xf32>
    %33 = tpu.matmul %28, %30, %cst_21 {dimension_numbers = #tpu.dot_dimension_numbers<[1], [1], [0], [0], [0, 0, 1, 0], [], []>} : vector<8x8xbf16>, vector<8x8xbf16>, vector<8x8xf32> -> vector<8x8xf32>
    %cst_22 = arith.constant 0.353553385 : f32
    %34 = vector.broadcast %cst_22 : f32 to vector<8x8xf32>
    %35 = arith.mulf %33, %34 : vector<8x8xf32>
    %36 = arith.addf %35, %0 : vector<8x8xf32>
    %cst_23 = arith.constant dense<0xFF800000> : vector<8xf32>
    %37 = vector.multi_reduction <maximumf>, %36, %cst_23 [1] : vector<8x8xf32> to vector<8xf32>
    %38 = vector.shape_cast %37 : vector<8xf32> to vector<8x1xf32>
    %39 = vector.broadcast %38 : vector<8x1xf32> to vector<8x8xf32>
    %40 = arith.subf %36, %39 : vector<8x8xf32>
    %41 = math.exp %40 : vector<8x8xf32>
    %cst_24 = arith.constant dense<0.000000e+00> : vector<8xf32>
    %42 = vector.multi_reduction <add>, %41, %cst_24 [1] : vector<8x8xf32> to vector<8xf32>
    %43 = vector.shape_cast %42 : vector<8xf32> to vector<8x1xf32>
    %44 = arith.truncf %41 : vector<8x8xf32> to vector<8x8xbf16>
    %cst_25 = arith.constant dense<0.000000e+00> : vector<8x8xf32>
    %45 = tpu.matmul %44, %32, %cst_25 {dimension_numbers = #tpu.dot_dimension_numbers<[1], [0], [0], [1], [0, 0, 1, 1], [], []>} : vector<8x8xbf16>, vector<8x8xbf16>, vector<8x8xf32> -> vector<8x8xf32>
    %46 = tpu.reciprocal %43 {approx = true} : vector<8x1xf32> -> vector<8x1xf32>
    %47 = vector.broadcast %46 : vector<8x1xf32> to vector<8x8xf32>
    %48 = arith.mulf %45, %47 : vector<8x8xf32>
    %49 = arith.truncf %48 : vector<8x8xf32> to vector<8x8xbf16>
    %c0_26 = arith.constant 0 : index
    %c0_27 = arith.constant 0 : index
    %c8_28 = arith.constant 8 : index
    %50 = vector.load %arg3[%c0_26, %c0_27, %c8_28] : memref<1x8x32xbf16, #tpu.memory_space<vmem>>, vector<1x8x8xbf16>
    %51 = vector.shape_cast %50 : vector<1x8x8xbf16> to vector<8x8xbf16>
    %52 = vector.shape_cast %49 : vector<8x8xbf16> to vector<1x8x8xbf16>
    tpu.vector_store %arg3[%c0_26, %c0_27, %c8_28], %52 {strides = array<i32>} : memref<1x8x32xbf16, #tpu.memory_space<vmem>>, vector<1x8x8xbf16>,
    %c0_29 = arith.constant 0 : index
    %c0_30 = arith.constant 0 : index
    %c16 = arith.constant 16 : index
    %53 = vector.load %arg1[%c0_29, %c0_30, %c16] : memref<1x8x96xbf16, #tpu.memory_space<vmem>>, vector<1x8x8xbf16>
    %54 = vector.shape_cast %53 : vector<1x8x8xbf16> to vector<8x8xbf16>
    %c0_31 = arith.constant 0 : index
    %c0_32 = arith.constant 0 : index
    %c48 = arith.constant 48 : index
    %55 = vector.load %arg1[%c0_31, %c0_32, %c48] : memref<1x8x96xbf16, #tpu.memory_space<vmem>>, vector<1x8x8xbf16>
    %56 = vector.shape_cast %55 : vector<1x8x8xbf16> to vector<8x8xbf16>
    %c0_33 = arith.constant 0 : index
    %c0_34 = arith.constant 0 : index
    %c80 = arith.constant 80 : index
    %57 = vector.load %arg1[%c0_33, %c0_34, %c80] : memref<1x8x96xbf16, #tpu.memory_space<vmem>>, vector<1x8x8xbf16>
    %58 = vector.shape_cast %57 : vector<1x8x8xbf16> to vector<8x8xbf16>
    %cst_35 = arith.constant dense<0.000000e+00> : vector<8x8xf32>
    %59 = tpu.matmul %54, %56, %cst_35 {dimension_numbers = #tpu.dot_dimension_numbers<[1], [1], [0], [0], [0, 0, 1, 0], [], []>} : vector<8x8xbf16>, vector<8x8xbf16>, vector<8x8xf32> -> vector<8x8xf32>
    %cst_36 = arith.constant 0.353553385 : f32
    %60 = vector.broadcast %cst_36 : f32 to vector<8x8xf32>
    %61 = arith.mulf %59, %60 : vector<8x8xf32>
    %62 = arith.addf %61, %0 : vector<8x8xf32>
    %cst_37 = arith.constant dense<0xFF800000> : vector<8xf32>
    %63 = vector.multi_reduction <maximumf>, %62, %cst_37 [1] : vector<8x8xf32> to vector<8xf32>
    %64 = vector.shape_cast %63 : vector<8xf32> to vector<8x1xf32>
    %65 = vector.broadcast %64 : vector<8x1xf32> to vector<8x8xf32>
    %66 = arith.subf %62, %65 : vector<8x8xf32>
    %67 = math.exp %66 : vector<8x8xf32>
    %cst_38 = arith.constant dense<0.000000e+00> : vector<8xf32>
    %68 = vector.multi_reduction <add>, %67, %cst_38 [1] : vector<8x8xf32> to vector<8xf32>
    %69 = vector.shape_cast %68 : vector<8xf32> to vector<8x1xf32>
    %70 = arith.truncf %67 : vector<8x8xf32> to vector<8x8xbf16>
    %cst_39 = arith.constant dense<0.000000e+00> : vector<8x8xf32>
    %71 = tpu.matmul %70, %58, %cst_39 {dimension_numbers = #tpu.dot_dimension_numbers<[1], [0], [0], [1], [0, 0, 1, 1], [], []>} : vector<8x8xbf16>, vector<8x8xbf16>, vector<8x8xf32> -> vector<8x8xf32>
    %72 = tpu.reciprocal %69 {approx = true} : vector<8x1xf32> -> vector<8x1xf32>
    %73 = vector.broadcast %72 : vector<8x1xf32> to vector<8x8xf32>
    %74 = arith.mulf %71, %73 : vector<8x8xf32>
    %75 = arith.truncf %74 : vector<8x8xf32> to vector<8x8xbf16>
    %c0_40 = arith.constant 0 : index
    %c0_41 = arith.constant 0 : index
    %c16_42 = arith.constant 16 : index
    %76 = vector.load %arg3[%c0_40, %c0_41, %c16_42] : memref<1x8x32xbf16, #tpu.memory_space<vmem>>, vector<1x8x8xbf16>
    %77 = vector.shape_cast %76 : vector<1x8x8xbf16> to vector<8x8xbf16>
    %78 = vector.shape_cast %75 : vector<8x8xbf16> to vector<1x8x8xbf16>
    tpu.vector_store %arg3[%c0_40, %c0_41, %c16_42], %78 {strides = array<i32>} : memref<1x8x32xbf16, #tpu.memory_space<vmem>>, vector<1x8x8xbf16>,
    %c0_43 = arith.constant 0 : index
    %c0_44 = arith.constant 0 : index
    %c24 = arith.constant 24 : index
    %79 = vector.load %arg1[%c0_43, %c0_44, %c24] : memref<1x8x96xbf16, #tpu.memory_space<vmem>>, vector<1x8x8xbf16>
    %80 = vector.shape_cast %79 : vector<1x8x8xbf16> to vector<8x8xbf16>
    %c0_45 = arith.constant 0 : index
    %c0_46 = arith.constant 0 : index
    %c56 = arith.constant 56 : index
    %81 = vector.load %arg1[%c0_45, %c0_46, %c56] : memref<1x8x96xbf16, #tpu.memory_space<vmem>>, vector<1x8x8xbf16>
    %82 = vector.shape_cast %81 : vector<1x8x8xbf16> to vector<8x8xbf16>
    %c0_47 = arith.constant 0 : index
    %c0_48 = arith.constant 0 : index
    %c88 = arith.constant 88 : index
    %83 = vector.load %arg1[%c0_47, %c0_48, %c88] : memref<1x8x96xbf16, #tpu.memory_space<vmem>>, vector<1x8x8xbf16>
    %84 = vector.shape_cast %83 : vector<1x8x8xbf16> to vector<8x8xbf16>
    %cst_49 = arith.constant dense<0.000000e+00> : vector<8x8xf32>
    %85 = tpu.matmul %80, %82, %cst_49 {dimension_numbers = #tpu.dot_dimension_numbers<[1], [1], [0], [0], [0, 0, 1, 0], [], []>} : vector<8x8xbf16>, vector<8x8xbf16>, vector<8x8xf32> -> vector<8x8xf32>
    %cst_50 = arith.constant 0.353553385 : f32
    %86 = vector.broadcast %cst_50 : f32 to vector<8x8xf32>
    %87 = arith.mulf %85, %86 : vector<8x8xf32>
    %88 = arith.addf %87, %0 : vector<8x8xf32>
    %cst_51 = arith.constant dense<0xFF800000> : vector<8xf32>
    %89 = vector.multi_reduction <maximumf>, %88, %cst_51 [1] : vector<8x8xf32> to vector<8xf32>
    %90 = vector.shape_cast %89 : vector<8xf32> to vector<8x1xf32>
    %91 = vector.broadcast %90 : vector<8x1xf32> to vector<8x8xf32>
    %92 = arith.subf %88, %91 : vector<8x8xf32>
    %93 = math.exp %92 : vector<8x8xf32>
    %cst_52 = arith.constant dense<0.000000e+00> : vector<8xf32>
    %94 = vector.multi_reduction <add>, %93, %cst_52 [1] : vector<8x8xf32> to vector<8xf32>
    %95 = vector.shape_cast %94 : vector<8xf32> to vector<8x1xf32>
    %96 = arith.truncf %93 : vector<8x8xf32> to vector<8x8xbf16>
    %cst_53 = arith.constant dense<0.000000e+00> : vector<8x8xf32>
    %97 = tpu.matmul %96, %84, %cst_53 {dimension_numbers = #tpu.dot_dimension_numbers<[1], [0], [0], [1], [0, 0, 1, 1], [], []>} : vector<8x8xbf16>, vector<8x8xbf16>, vector<8x8xf32> -> vector<8x8xf32>
    %98 = tpu.reciprocal %95 {approx = true} : vector<8x1xf32> -> vector<8x1xf32>
    %99 = vector.broadcast %98 : vector<8x1xf32> to vector<8x8xf32>
    %100 = arith.mulf %97, %99 : vector<8x8xf32>
    %101 = arith.truncf %100 : vector<8x8xf32> to vector<8x8xbf16>
    %c0_54 = arith.constant 0 : index
    %c0_55 = arith.constant 0 : index
    %c24_56 = arith.constant 24 : index
    %102 = vector.load %arg3[%c0_54, %c0_55, %c24_56] : memref<1x8x32xbf16, #tpu.memory_space<vmem>>, vector<1x8x8xbf16>
    %103 = vector.shape_cast %102 : vector<1x8x8xbf16> to vector<8x8xbf16>
    %104 = vector.shape_cast %101 : vector<8x8xbf16> to vector<1x8x8xbf16>
    tpu.vector_store %arg3[%c0_54, %c0_55, %c24_56], %104 {strides = array<i32>} : memref<1x8x32xbf16, #tpu.memory_space<vmem>>, vector<1x8x8xbf16>,
    return
  }
  func.func @transform_0(%arg0: i32) -> (i32, i32, i32) {
    %c0_i32 = arith.constant 0 : i32
    %c0_i32_0 = arith.constant 0 : i32
    %c0_i32_1 = arith.constant 0 : i32
    return %arg0, %c0_i32, %c0_i32_0 : i32, i32, i32
  }
  func.func @transform_1(%arg0: i32) -> (i32, i32) {
    %c0_i32 = arith.constant 0 : i32
    %c0_i32_0 = arith.constant 0 : i32
    %c0_i32_1 = arith.constant 0 : i32
    return %c0_i32, %c0_i32_0 : i32, i32
  }
  func.func @transform_2(%arg0: i32) -> (i32, i32, i32) {
    %c0_i32 = arith.constant 0 : i32
    %c0_i32_0 = arith.constant 0 : i32
    %c0_i32_1 = arith.constant 0 : i32
    return %arg0, %c0_i32, %c0_i32_0 : i32, i32, i32
  }
}

module attributes {stable_mosaic.version = 11 : i64} {
  func.func @_ln_matmul_kernel(%arg0: i32, %arg1: i32, %arg2: memref<2x8x32xf32, #tpu.memory_space<vmem>>, %arg3: memref<1x32xf32, #tpu.memory_space<vmem>>, %arg4: memref<1x32xf32, #tpu.memory_space<vmem>>, %arg5: memref<32x96xbf16, #tpu.memory_space<vmem>>, %arg6: memref<1x96xf32, #tpu.memory_space<vmem>>, %arg7: memref<2x8x96xbf16, #tpu.memory_space<vmem>>) attributes {dimension_semantics = [#tpu.dimension_semantics<parallel>, #tpu.dimension_semantics<parallel>], iteration_bounds = array<i64: 1, 1>, scalar_prefetch = 0 : i64, scratch_operands = 0 : i64, tpu.core_type = #tpu.core_type<tc>, window_params = [{transform_indices = @transform_0, window_bounds = array<i64: 2, 8, 32>}, {pipeline_mode = #tpu.pipeline_mode<synchronous>, transform_indices = @transform_1, window_bounds = array<i64: 1, 32>}, {pipeline_mode = #tpu.pipeline_mode<synchronous>, transform_indices = @transform_2, window_bounds = array<i64: 1, 32>}, {transform_indices = @transform_3, window_bounds = array<i64: 32, 96>}, {transform_indices = @transform_4, window_bounds = array<i64: 1, 96>}, {transform_indices = @transform_5, window_bounds = array<i64: 2, 8, 96>}]} {
    %c0 = arith.constant 0 : index
    %c0_0 = arith.constant 0 : index
    %c0_1 = arith.constant 0 : index
    %0 = vector.load %arg2[%c0, %c0_0, %c0_1] : memref<2x8x32xf32, #tpu.memory_space<vmem>>, vector<2x8x32xf32>
    %cst = arith.constant dense<0.000000e+00> : vector<2x8xf32>
    %1 = vector.multi_reduction <add>, %0, %cst [2] : vector<2x8x32xf32> to vector<2x8xf32>
    %2 = vector.shape_cast %1 : vector<2x8xf32> to vector<2x8x1xf32>
    %cst_2 = arith.constant 3.200000e+01 : f32
    %3 = vector.broadcast %cst_2 : f32 to vector<2x8x1xf32>
    %4 = arith.divf %2, %3 : vector<2x8x1xf32>
    %5 = vector.broadcast %4 : vector<2x8x1xf32> to vector<2x8x32xf32>
    %6 = arith.subf %0, %5 : vector<2x8x32xf32>
    %7 = arith.mulf %6, %6 : vector<2x8x32xf32>
    %cst_3 = arith.constant dense<0.000000e+00> : vector<2x8xf32>
    %8 = vector.multi_reduction <add>, %7, %cst_3 [2] : vector<2x8x32xf32> to vector<2x8xf32>
    %9 = vector.shape_cast %8 : vector<2x8xf32> to vector<2x8x1xf32>
    %cst_4 = arith.constant 3.200000e+01 : f32
    %10 = vector.broadcast %cst_4 : f32 to vector<2x8x1xf32>
    %11 = arith.divf %9, %10 : vector<2x8x1xf32>
    %cst_5 = arith.constant 9.99999974E-6 : f32
    %12 = vector.broadcast %cst_5 : f32 to vector<2x8x1xf32>
    %13 = arith.addf %11, %12 : vector<2x8x1xf32>
    %14 = math.rsqrt %13 : vector<2x8x1xf32>
    %15 = vector.broadcast %14 : vector<2x8x1xf32> to vector<2x8x32xf32>
    %16 = arith.mulf %6, %15 : vector<2x8x32xf32>
    %c0_6 = arith.constant 0 : index
    %c0_7 = arith.constant 0 : index
    %17 = vector.load %arg3[%c0_6, %c0_7] : memref<1x32xf32, #tpu.memory_space<vmem>>, vector<1x32xf32>
    %18 = vector.shape_cast %17 : vector<1x32xf32> to vector<1x1x32xf32>
    %19 = vector.broadcast %18 : vector<1x1x32xf32> to vector<2x8x32xf32>
    %20 = arith.mulf %16, %19 : vector<2x8x32xf32>
    %c0_8 = arith.constant 0 : index
    %c0_9 = arith.constant 0 : index
    %21 = vector.load %arg4[%c0_8, %c0_9] : memref<1x32xf32, #tpu.memory_space<vmem>>, vector<1x32xf32>
    %22 = vector.shape_cast %21 : vector<1x32xf32> to vector<1x1x32xf32>
    %23 = vector.broadcast %22 : vector<1x1x32xf32> to vector<2x8x32xf32>
    %24 = arith.addf %20, %23 : vector<2x8x32xf32>
    %25 = vector.shape_cast %24 : vector<2x8x32xf32> to vector<16x32xf32>
    %26 = arith.truncf %25 : vector<16x32xf32> to vector<16x32xbf16>
    %c0_10 = arith.constant 0 : index
    %c0_11 = arith.constant 0 : index
    %27 = vector.load %arg5[%c0_10, %c0_11] : memref<32x96xbf16, #tpu.memory_space<vmem>>, vector<32x96xbf16>
    %cst_12 = arith.constant dense<0.000000e+00> : vector<16x96xf32>
    %28 = tpu.matmul %26, %27, %cst_12 {dimension_numbers = #tpu.dot_dimension_numbers<[1], [0], [0], [1], [0, 0, 1, 1], [], []>} : vector<16x32xbf16>, vector<32x96xbf16>, vector<16x96xf32> -> vector<16x96xf32>
    %c0_13 = arith.constant 0 : index
    %c0_14 = arith.constant 0 : index
    %29 = vector.load %arg6[%c0_13, %c0_14] : memref<1x96xf32, #tpu.memory_space<vmem>>, vector<1x96xf32>
    %30 = vector.broadcast %29 : vector<1x96xf32> to vector<16x96xf32>
    %31 = arith.addf %28, %30 : vector<16x96xf32>
    %32 = vector.shape_cast %31 : vector<16x96xf32> to vector<2x8x96xf32>
    %33 = arith.truncf %32 : vector<2x8x96xf32> to vector<2x8x96xbf16>
    %c0_15 = arith.constant 0 : index
    %c0_16 = arith.constant 0 : index
    %c0_17 = arith.constant 0 : index
    %34 = vector.load %arg7[%c0_15, %c0_16, %c0_17] : memref<2x8x96xbf16, #tpu.memory_space<vmem>>, vector<2x8x96xbf16>
    tpu.vector_store %arg7[%c0_15, %c0_16, %c0_17], %33 {strides = array<i32>} : memref<2x8x96xbf16, #tpu.memory_space<vmem>>, vector<2x8x96xbf16>,
    return
  }
  func.func @transform_0(%arg0: i32, %arg1: i32) -> (i32, i32, i32) {
    %c0_i32 = arith.constant 0 : i32
    %c0_i32_0 = arith.constant 0 : i32
    %c0_i32_1 = arith.constant 0 : i32
    return %arg0, %c0_i32, %c0_i32_0 : i32, i32, i32
  }
  func.func @transform_1(%arg0: i32, %arg1: i32) -> (i32, i32) {
    %c0_i32 = arith.constant 0 : i32
    %c0_i32_0 = arith.constant 0 : i32
    %c0_i32_1 = arith.constant 0 : i32
    return %c0_i32, %c0_i32_0 : i32, i32
  }
  func.func @transform_2(%arg0: i32, %arg1: i32) -> (i32, i32) {
    %c0_i32 = arith.constant 0 : i32
    %c0_i32_0 = arith.constant 0 : i32
    %c0_i32_1 = arith.constant 0 : i32
    return %c0_i32, %c0_i32_0 : i32, i32
  }
  func.func @transform_3(%arg0: i32, %arg1: i32) -> (i32, i32) {
    %c0_i32 = arith.constant 0 : i32
    %c0_i32_0 = arith.constant 0 : i32
    return %c0_i32, %arg1 : i32, i32
  }
  func.func @transform_4(%arg0: i32, %arg1: i32) -> (i32, i32) {
    %c0_i32 = arith.constant 0 : i32
    %c0_i32_0 = arith.constant 0 : i32
    return %c0_i32, %arg1 : i32, i32
  }
  func.func @transform_5(%arg0: i32, %arg1: i32) -> (i32, i32, i32) {
    %c0_i32 = arith.constant 0 : i32
    %c0_i32_0 = arith.constant 0 : i32
    return %arg0, %c0_i32, %arg1 : i32, i32, i32
  }
}

module attributes {stable_mosaic.version = 11 : i64} {
  func.func @_ln_matmul_kernel(%arg0: i32, %arg1: i32, %arg2: memref<2x8x32xf32, #tpu.memory_space<vmem>>, %arg3: memref<1x32xf32, #tpu.memory_space<vmem>>, %arg4: memref<1x32xf32, #tpu.memory_space<vmem>>, %arg5: memref<32x128xbf16, #tpu.memory_space<vmem>>, %arg6: memref<1x128xf32, #tpu.memory_space<vmem>>, %arg7: memref<2x8x128xbf16, #tpu.memory_space<vmem>>) attributes {dimension_semantics = [#tpu.dimension_semantics<parallel>, #tpu.dimension_semantics<parallel>], iteration_bounds = array<i64: 1, 1>, scalar_prefetch = 0 : i64, scratch_operands = 0 : i64, tpu.core_type = #tpu.core_type<tc>, window_params = [{transform_indices = @transform_0, window_bounds = array<i64: 2, 8, 32>}, {pipeline_mode = #tpu.pipeline_mode<synchronous>, transform_indices = @transform_1, window_bounds = array<i64: 1, 32>}, {pipeline_mode = #tpu.pipeline_mode<synchronous>, transform_indices = @transform_2, window_bounds = array<i64: 1, 32>}, {transform_indices = @transform_3, window_bounds = array<i64: 32, 128>}, {transform_indices = @transform_4, window_bounds = array<i64: 1, 128>}, {transform_indices = @transform_5, window_bounds = array<i64: 2, 8, 128>}]} {
    %c0 = arith.constant 0 : index
    %c0_0 = arith.constant 0 : index
    %c0_1 = arith.constant 0 : index
    %0 = vector.load %arg2[%c0, %c0_0, %c0_1] : memref<2x8x32xf32, #tpu.memory_space<vmem>>, vector<2x8x32xf32>
    %cst = arith.constant dense<0.000000e+00> : vector<2x8xf32>
    %1 = vector.multi_reduction <add>, %0, %cst [2] : vector<2x8x32xf32> to vector<2x8xf32>
    %2 = vector.shape_cast %1 : vector<2x8xf32> to vector<2x8x1xf32>
    %cst_2 = arith.constant 3.200000e+01 : f32
    %3 = vector.broadcast %cst_2 : f32 to vector<2x8x1xf32>
    %4 = arith.divf %2, %3 : vector<2x8x1xf32>
    %5 = vector.broadcast %4 : vector<2x8x1xf32> to vector<2x8x32xf32>
    %6 = arith.subf %0, %5 : vector<2x8x32xf32>
    %7 = arith.mulf %6, %6 : vector<2x8x32xf32>
    %cst_3 = arith.constant dense<0.000000e+00> : vector<2x8xf32>
    %8 = vector.multi_reduction <add>, %7, %cst_3 [2] : vector<2x8x32xf32> to vector<2x8xf32>
    %9 = vector.shape_cast %8 : vector<2x8xf32> to vector<2x8x1xf32>
    %cst_4 = arith.constant 3.200000e+01 : f32
    %10 = vector.broadcast %cst_4 : f32 to vector<2x8x1xf32>
    %11 = arith.divf %9, %10 : vector<2x8x1xf32>
    %cst_5 = arith.constant 9.99999974E-6 : f32
    %12 = vector.broadcast %cst_5 : f32 to vector<2x8x1xf32>
    %13 = arith.addf %11, %12 : vector<2x8x1xf32>
    %14 = math.rsqrt %13 : vector<2x8x1xf32>
    %15 = vector.broadcast %14 : vector<2x8x1xf32> to vector<2x8x32xf32>
    %16 = arith.mulf %6, %15 : vector<2x8x32xf32>
    %c0_6 = arith.constant 0 : index
    %c0_7 = arith.constant 0 : index
    %17 = vector.load %arg3[%c0_6, %c0_7] : memref<1x32xf32, #tpu.memory_space<vmem>>, vector<1x32xf32>
    %18 = vector.shape_cast %17 : vector<1x32xf32> to vector<1x1x32xf32>
    %19 = vector.broadcast %18 : vector<1x1x32xf32> to vector<2x8x32xf32>
    %20 = arith.mulf %16, %19 : vector<2x8x32xf32>
    %c0_8 = arith.constant 0 : index
    %c0_9 = arith.constant 0 : index
    %21 = vector.load %arg4[%c0_8, %c0_9] : memref<1x32xf32, #tpu.memory_space<vmem>>, vector<1x32xf32>
    %22 = vector.shape_cast %21 : vector<1x32xf32> to vector<1x1x32xf32>
    %23 = vector.broadcast %22 : vector<1x1x32xf32> to vector<2x8x32xf32>
    %24 = arith.addf %20, %23 : vector<2x8x32xf32>
    %25 = vector.shape_cast %24 : vector<2x8x32xf32> to vector<16x32xf32>
    %26 = arith.truncf %25 : vector<16x32xf32> to vector<16x32xbf16>
    %c0_10 = arith.constant 0 : index
    %c0_11 = arith.constant 0 : index
    %27 = vector.load %arg5[%c0_10, %c0_11] : memref<32x128xbf16, #tpu.memory_space<vmem>>, vector<32x128xbf16>
    %cst_12 = arith.constant dense<0.000000e+00> : vector<16x128xf32>
    %28 = tpu.matmul %26, %27, %cst_12 {dimension_numbers = #tpu.dot_dimension_numbers<[1], [0], [0], [1], [0, 0, 1, 1], [], []>} : vector<16x32xbf16>, vector<32x128xbf16>, vector<16x128xf32> -> vector<16x128xf32>
    %c0_13 = arith.constant 0 : index
    %c0_14 = arith.constant 0 : index
    %29 = vector.load %arg6[%c0_13, %c0_14] : memref<1x128xf32, #tpu.memory_space<vmem>>, vector<1x128xf32>
    %30 = vector.broadcast %29 : vector<1x128xf32> to vector<16x128xf32>
    %31 = arith.addf %28, %30 : vector<16x128xf32>
    %cst_15 = arith.constant 1.702000e+00 : f32
    %32 = vector.broadcast %cst_15 : f32 to vector<16x128xf32>
    %33 = arith.mulf %32, %31 : vector<16x128xf32>
    %34 = arith.negf %33 : vector<16x128xf32>
    %35 = math.exp %34 : vector<16x128xf32>
    %cst_16 = arith.constant 1.000000e+00 : f32
    %36 = vector.broadcast %cst_16 : f32 to vector<16x128xf32>
    %37 = arith.addf %36, %35 : vector<16x128xf32>
    %38 = arith.divf %36, %37 : vector<16x128xf32>
    %39 = arith.mulf %31, %38 : vector<16x128xf32>
    %40 = vector.shape_cast %39 : vector<16x128xf32> to vector<2x8x128xf32>
    %41 = arith.truncf %40 : vector<2x8x128xf32> to vector<2x8x128xbf16>
    %c0_17 = arith.constant 0 : index
    %c0_18 = arith.constant 0 : index
    %c0_19 = arith.constant 0 : index
    %42 = vector.load %arg7[%c0_17, %c0_18, %c0_19] : memref<2x8x128xbf16, #tpu.memory_space<vmem>>, vector<2x8x128xbf16>
    tpu.vector_store %arg7[%c0_17, %c0_18, %c0_19], %41 {strides = array<i32>} : memref<2x8x128xbf16, #tpu.memory_space<vmem>>, vector<2x8x128xbf16>,
    return
  }
  func.func @transform_0(%arg0: i32, %arg1: i32) -> (i32, i32, i32) {
    %c0_i32 = arith.constant 0 : i32
    %c0_i32_0 = arith.constant 0 : i32
    %c0_i32_1 = arith.constant 0 : i32
    return %arg0, %c0_i32, %c0_i32_0 : i32, i32, i32
  }
  func.func @transform_1(%arg0: i32, %arg1: i32) -> (i32, i32) {
    %c0_i32 = arith.constant 0 : i32
    %c0_i32_0 = arith.constant 0 : i32
    %c0_i32_1 = arith.constant 0 : i32
    return %c0_i32, %c0_i32_0 : i32, i32
  }
  func.func @transform_2(%arg0: i32, %arg1: i32) -> (i32, i32) {
    %c0_i32 = arith.constant 0 : i32
    %c0_i32_0 = arith.constant 0 : i32
    %c0_i32_1 = arith.constant 0 : i32
    return %c0_i32, %c0_i32_0 : i32, i32
  }
  func.func @transform_3(%arg0: i32, %arg1: i32) -> (i32, i32) {
    %c0_i32 = arith.constant 0 : i32
    %c0_i32_0 = arith.constant 0 : i32
    return %c0_i32, %arg1 : i32, i32
  }
  func.func @transform_4(%arg0: i32, %arg1: i32) -> (i32, i32) {
    %c0_i32 = arith.constant 0 : i32
    %c0_i32_0 = arith.constant 0 : i32
    return %c0_i32, %arg1 : i32, i32
  }
  func.func @transform_5(%arg0: i32, %arg1: i32) -> (i32, i32, i32) {
    %c0_i32 = arith.constant 0 : i32
    %c0_i32_0 = arith.constant 0 : i32
    return %arg0, %c0_i32, %arg1 : i32, i32, i32
  }
}

module attributes {stable_mosaic.version = 11 : i64} {
  func.func @_matmul_bias_res_kernel(%arg0: i32, %arg1: i32, %arg2: memref<2x8x128xbf16, #tpu.memory_space<vmem>>, %arg3: memref<128x32xbf16, #tpu.memory_space<vmem>>, %arg4: memref<1x32xf32, #tpu.memory_space<vmem>>, %arg5: memref<2x8x32xf32, #tpu.memory_space<vmem>>, %arg6: memref<2x8x32xf32, #tpu.memory_space<vmem>>) attributes {dimension_semantics = [#tpu.dimension_semantics<parallel>, #tpu.dimension_semantics<parallel>], iteration_bounds = array<i64: 1, 1>, scalar_prefetch = 0 : i64, scratch_operands = 0 : i64, tpu.core_type = #tpu.core_type<tc>, window_params = [{transform_indices = @transform_0, window_bounds = array<i64: 2, 8, 128>}, {transform_indices = @transform_1, window_bounds = array<i64: 128, 32>}, {transform_indices = @transform_2, window_bounds = array<i64: 1, 32>}, {transform_indices = @transform_3, window_bounds = array<i64: 2, 8, 32>}, {transform_indices = @transform_4, window_bounds = array<i64: 2, 8, 32>}]} {
    %c0 = arith.constant 0 : index
    %c0_0 = arith.constant 0 : index
    %c0_1 = arith.constant 0 : index
    %0 = vector.load %arg2[%c0, %c0_0, %c0_1] : memref<2x8x128xbf16, #tpu.memory_space<vmem>>, vector<2x8x128xbf16>
    %1 = vector.shape_cast %0 : vector<2x8x128xbf16> to vector<16x128xbf16>
    %c0_2 = arith.constant 0 : index
    %c0_3 = arith.constant 0 : index
    %2 = vector.load %arg3[%c0_2, %c0_3] : memref<128x32xbf16, #tpu.memory_space<vmem>>, vector<128x32xbf16>
    %cst = arith.constant dense<0.000000e+00> : vector<16x32xf32>
    %3 = tpu.matmul %1, %2, %cst {dimension_numbers = #tpu.dot_dimension_numbers<[1], [0], [0], [1], [0, 0, 1, 1], [], []>} : vector<16x128xbf16>, vector<128x32xbf16>, vector<16x32xf32> -> vector<16x32xf32>
    %4 = vector.shape_cast %3 : vector<16x32xf32> to vector<2x8x32xf32>
    %c0_4 = arith.constant 0 : index
    %c0_5 = arith.constant 0 : index
    %5 = vector.load %arg4[%c0_4, %c0_5] : memref<1x32xf32, #tpu.memory_space<vmem>>, vector<1x32xf32>
    %6 = vector.shape_cast %5 : vector<1x32xf32> to vector<1x1x32xf32>
    %7 = vector.broadcast %6 : vector<1x1x32xf32> to vector<2x8x32xf32>
    %8 = arith.addf %4, %7 : vector<2x8x32xf32>
    %c0_6 = arith.constant 0 : index
    %c0_7 = arith.constant 0 : index
    %c0_8 = arith.constant 0 : index
    %9 = vector.load %arg5[%c0_6, %c0_7, %c0_8] : memref<2x8x32xf32, #tpu.memory_space<vmem>>, vector<2x8x32xf32>
    %10 = arith.addf %8, %9 : vector<2x8x32xf32>
    %c0_9 = arith.constant 0 : index
    %c0_10 = arith.constant 0 : index
    %c0_11 = arith.constant 0 : index
    %11 = vector.load %arg6[%c0_9, %c0_10, %c0_11] : memref<2x8x32xf32, #tpu.memory_space<vmem>>, vector<2x8x32xf32>
    tpu.vector_store %arg6[%c0_9, %c0_10, %c0_11], %10 {strides = array<i32>} : memref<2x8x32xf32, #tpu.memory_space<vmem>>, vector<2x8x32xf32>,
    return
  }
  func.func @transform_0(%arg0: i32, %arg1: i32) -> (i32, i32, i32) {
    %c0_i32 = arith.constant 0 : i32
    %c0_i32_0 = arith.constant 0 : i32
    %c0_i32_1 = arith.constant 0 : i32
    return %arg0, %c0_i32, %c0_i32_0 : i32, i32, i32
  }
  func.func @transform_1(%arg0: i32, %arg1: i32) -> (i32, i32) {
    %c0_i32 = arith.constant 0 : i32
    %c0_i32_0 = arith.constant 0 : i32
    return %c0_i32, %arg1 : i32, i32
  }
  func.func @transform_2(%arg0: i32, %arg1: i32) -> (i32, i32) {
    %c0_i32 = arith.constant 0 : i32
    %c0_i32_0 = arith.constant 0 : i32
    return %c0_i32, %arg1 : i32, i32
  }
  func.func @transform_3(%arg0: i32, %arg1: i32) -> (i32, i32, i32) {
    %c0_i32 = arith.constant 0 : i32
    %c0_i32_0 = arith.constant 0 : i32
    return %arg0, %c0_i32, %arg1 : i32, i32, i32
  }
  func.func @transform_4(%arg0: i32, %arg1: i32) -> (i32, i32, i32) {
    %c0_i32 = arith.constant 0 : i32
    %c0_i32_0 = arith.constant 0 : i32
    return %arg0, %c0_i32, %arg1 : i32, i32, i32
  }
}

</mosaic_0001>

<bundles_post_ra>
// kernel: residual_attention_block.7
= control target key start
LH: loop header
LB: loop body
LE: loop exit
PB: predicated region body
PF: predicated region fallthrough
CT: control target
= control target key end

     0   :  { %v126_v0 = vmov 0.0   ;;  %vm127_vm0 = vmmov 0   ;;  %vm41_vm1 = vcmask 261120   ;;  %s180_s1 = inlined_call_operand.vmem [shape: bf16[32,32], index: 1, kind: input, shape index: {}]   ;;  %s181_s0 = inlined_call_operand.vmem [shape: bf16[2,8,32], index: 0, kind: input, shape index: {}]   ;;  %s182_s2 = inlined_call_operand.vmem [shape: f32[1,32], index: 2, kind: input, shape index: {}]   ;;  %s183_s3 = inlined_call_operand.vmem [shape: f32[2,8,32], index: 3, kind: input, shape index: {}, may-alias: {3,4}]   ;;  %s184_s4 = inlined_call_operand.vmem [shape: f32[2,8,32], index: 4, kind: output, shape index: {}, may-alias: {3,4}]  }
   0x1   :  { %113 = vmatprep.subr.bf16.mxu0 %v126_v0  ;;  %v123_v1 = vld [vmem:[%s180_s1] sm:$0xff]   ;;  %117 = vmatprep.mubr.msk.bf16.mxu0 %vm127_vm0, %v126_v0  ;;  %v124_v2 = vld [vmem:[%s180_s1 + $0x8] sm:$0xff]  }
   0x2   :  { %114 = vmatpush3.bf16.msra.mxu0 %v123_v1  ;;  %v125_v3 = vld [vmem:[%s181_s0] sm:$0xff]   ;;  %v96_v10 = vld [vmem:[%s183_s3 + $0x8] sm:$0xff] }
   0x3   :  { %115 = vmatprep.subr.bf16.mxu0 %v126_v0  ;;  %v109_v4 = vld [vmem:[%s182_s2] ss:$0 sm:$0xff] }
   0x4   :  { %v95_v6 = vld [vmem:[%s183_s3] sm:$0xff] }
   0x6   :  { %116 = vmatpush3.bf16.msra.mxu0 %v124_v2 }
   0x9   :  { %118 = vmatmul.mubr.msk.bf16.vlgmr.msra.gmra.mrb[0].mxu0 %vm41_vm1, %v125_v3 }
  0xdc   :  { %v79_v5 = vpop.f32.mrb[0].mxu0 }
  0xdd   :  { %v93_v7 = vadd.f32 %v109_v4, %v79_v5  ;;  %v119_v8 = vpop.f32.mrb[1].mxu0 }
  0xde   :  { %v82_v9 = vpop.f32.mrb[2].mxu0 }
  0xdf   :  { %v97_v11 = vadd.f32 %v95_v6, %v93_v7  ;;  %v94_v12 = vadd.f32 %v109_v4, %v82_v9  ;;  %v120_v13 = vpop.f32.mrb[3].mxu0 }
  0xe1   :  { %99 = vst.msk [vmem:[%s184_s4] sm:$0xff] %vm41_vm1, %v97_v11  ;;  %v98_v14 = vadd.f32 %v96_v10, %v94_v12 }
  0xe3   :  { %100 = vst.msk [vmem:[%s184_s4 + $0x8] sm:$0xff] %vm41_vm1, %v98_v14 }

// kernel: residual_attention_block.5
= control target key start
LH: loop header
LB: loop body
LE: loop exit
PB: predicated region body
PF: predicated region fallthrough
CT: control target
= control target key end

     0   :  { %vm23_vm0 = vcmask 261120   ;;  %v171_v15 = vmov 0.0   ;;  %vm172_vm1 = vmmov 0   ;;  %vm139_vm2 = vcmask 781312   ;;  %s235_s0 = inlined_call_operand.vmem [shape: f32[2,8,32], index: 0, kind: input, shape index: {}]   ;;  %s236_s3 = inlined_call_operand.vmem [shape: bf16[32,96], index: 3, kind: input, shape index: {}]   ;;  %s237_s1 = inlined_call_operand.vmem [shape: f32[1,32], index: 1, kind: input, shape index: {}]   ;;  %s238_s2 = inlined_call_operand.vmem [shape: f32[1,32], index: 2, kind: input, shape index: {}]   ;;  %s239_s4 = inlined_call_operand.vmem [shape: f32[1,96], index: 4, kind: input, shape index: {}]   ;;  %s240_s5 = inlined_call_operand.vmem [shape: bf16[2,8,96], index: 5, kind: output, shape index: {}]  }
   0x1   :  { %v21_v0 = vld [vmem:[%s235_s0] sm:$0xff]  ;;  %v22_v1 = vld [vmem:[%s235_s0 + $0x8] sm:$0xff]  ;;  %155 = vmatprep.subr.bf16.mxu0 %v171_v15  ;;  %159 = vmatprep.mubr.msk.bf16.mxu0 %vm172_vm1, %v171_v15 }
   0x2   :  { %v24_v2 = vsel %vm23_vm0, %v21_v0, 0.0  ;;  %v27_v3 = vsel %vm23_vm0, %v22_v1, 0.0  ;;  %v165_v14 = vld [vmem:[%s236_s3] sm:$0xff]   ;;  %v166_v16 = vld [vmem:[%s236_s3 + $0x8] sm:$0xff]  }
   0x3   :  { %25 = vadd.xlane.f32.xlu0 %v24_v2  ;;  %156 = vmatpush3.bf16.msra.mxu0 %v165_v14  ;;  %v146_v25 = vld [vmem:[%s237_s1] ss:$0 sm:$0xff] }
   0x4   :  { %157 = vmatprep.subr.bf16.mxu0 %v171_v15  ;;  %v147_v29 = vld [vmem:[%s238_s2] ss:$0 sm:$0xff] }
   0x5   :  { %v148_v34 = vld [vmem:[%s239_s4] ss:$0 sm:$0xff] }
   0x7   :  { %28 = vadd.xlane.f32.xlu0 %v27_v3  ;;  %158 = vmatpush3.bf16.msra.mxu0 %v166_v16 }
  0x90   :  { %v26_v4 = vpop.xlane.xlu0 %25 }
  0x91   :  { %v31_v5 = vmul.f32 0.03125, %v26_v4 }
  0x93   :  { %v33_v6 = vsub.f32 %v21_v0, %v31_v5 }
  0x94   :  { %v29_v7 = vpop.xlane.xlu0 %28 }
  0x95   :  { %v32_v8 = vmul.f32 0.03125, %v29_v7  ;;  %v35_v9 = vmul.f32 %v33_v6, %v33_v6 }
  0x97   :  { %v34_v10 = vsub.f32 %v22_v1, %v32_v8  ;;  %v37_v11 = vsel %vm23_vm0, %v35_v9, 0.0 }
  0x98   :  { %38 = vadd.xlane.f32.xlu1 %v37_v11 }
  0x99   :  { %v36_v12 = vmul.f32 %v34_v10, %v34_v10 }
  0x9b   :  { %v40_v13 = vsel %vm23_vm0, %v36_v12, 0.0 }
  0x9c   :  { %41 = vadd.xlane.f32.xlu1 %v40_v13 }
 0x125   :  { %v39_v17 = vpop.xlane.xlu1 %38 }
 0x126   :  { %v43_v18 = vmul.f32 0.03125, %v39_v17 }
 0x128   :  { %v45_v19 = vadd.f32 1e-05, %v43_v18 }
 0x129   :  { %v42_v20 = vpop.xlane.xlu1 %41 }
 0x12a   :  { %167 = vrsqrt.f32 %v45_v19  ;;  %v44_v21 = vmul.f32 0.03125, %v42_v20 }
 0x12c   :  { %v46_v22 = vadd.f32 1e-05, %v44_v21 }
 0x12e   :  { %169 = vrsqrt.f32 %v46_v22 }
 0x134   :  { %v168_v23 = vpop.eup %167 }
 0x135   :  { %v49_v24 = vmul.f32 %v168_v23, %v33_v6 }
 0x137   :  { %v58_v28 = vmul.f32 %v146_v25, %v49_v24 }
 0x138   :  { %v170_v26 = vpop.eup %169 }
 0x139   :  { %v50_v27 = vmul.f32 %v170_v26, %v34_v10  ;;  %v67_v31 = vadd.f32 %v147_v29, %v58_v28 }
 0x13b   :  { %v59_v30 = vmul.f32 %v146_v25, %v50_v27 }
 0x13d   :  { %v68_v32 = vadd.f32 %v147_v29, %v59_v30 }
 0x13f   :  { %v69_v33 = vpack.c.bf16 %v68_v32, %v67_v31 }
 0x141   :  { %160 = vmatmul.mubr.msk.bf16.vlgmr.msra.gmra.mrb[0].mxu0 %vm23_vm0, %v69_v33 }
 0x214   :  { %v130_v35 = vpop.f32.mrb[0].mxu0 }
 0x215   :  { %v131_v36 = vadd.f32 %v148_v34, %v130_v35  ;;  %v161_v37 = vpop.f32.mrb[1].mxu0 }
 0x216   :  { %v133_v38 = vpop.f32.mrb[2].mxu0 }
 0x217   :  { %v137_v39 = vpack.c.bf16 %v131_v36, %v131_v36  ;;  %v134_v40 = vadd.f32 %v148_v34, %v133_v38  ;;  %v162_v41 = vpop.f32.mrb[3].mxu0 }
 0x219   :  { %140 = vst.msk [vmem:[%s240_s5] sm:$0xf] %vm139_vm2, %v137_v39  ;;  %v138_v42 = vpack.c.bf16 %v134_v40, %v134_v40 }
 0x21b   :  { %141 = vst.msk [vmem:[%s240_s5 + $0x4] sm:$0xf] %vm139_vm2, %v138_v42 }

// kernel: residual_attention_block.6
= control target key start
LH: loop header
LB: loop body
LE: loop exit
PB: predicated region body
PF: predicated region fallthrough
CT: control target
= control target key end

     0   :  { %s862_s9 = smov 0   ;;  %s967_s0 = inlined_call_operand.vmem [shape: bf16[2,8,96], index: 0, kind: input, shape index: {}]   ;;  %s968_s1 = inlined_call_operand.vmem [shape: f32[8,8], index: 1, kind: input, shape index: {}]   ;;  %s969_s2 = inlined_call_operand.vmem [shape: bf16[2,8,32], index: 2, kind: output, shape index: {}]  }
   0x1 LB: > { %s688_s10 = sadd.s32 4294967295, %s829_s9   ;;  %p692_p0 = scmp.ge.s32.totalorder %s829_s9, 1  ;;  %s829_s9 = sphi %s862_s9, %s12_s9  }
   0x2   : > { %p111_p1 = scmp.lt.s32.totalorder %s829_s9, 3 }
   0x4   : > { %p112_p2 = pnand %p692_p0, %p111_p1 }
   0x5   : > { %p131_p3 = scmp.lt.s32.totalorder (!%p112_p2), %s688_s10, 1  ;;  %v831_v0 = vmov (!%p112_p2), 0.0   ;;  %vm832_vm0 = vmmov (!%p112_p2), 0   ;;  %s833_s15 = smov (!%p112_p2), 96   ;;  %vm147_vm1 = vcmask (!%p112_p2), 64512   ;;  %v900_v9 = vld [vmem:[%s968_s1] sm:$0xff] (!%p112_p2) }
   0x6   : > { %115 = sbr.rel (%p112_p2) target bundleno = 1250 (0x4e2), region = 28  ;;  %731 = vmatprep.subr.bf16.mxu0 (!%p112_p2), %v831_v0  ;;  %733 = vmatprep.mubr.msk.bf16.mxu0 (!%p112_p2), %vm832_vm0, %v831_v0  ;;  %s834_s16 = smov (!%p112_p2), 64   ;;  %vm211_vm2 = vcmask (!%p112_p2), 1043456   ;;  %vm258_vm3 = vcmask (!%p112_p2), 60416   ;;  %vm383_vm4 = vcmask (!%p112_p2), 126016   ;;  %vm508_vm5 = vcmask (!%p112_p2), 191616  }
   0x7   : > { %737 = vmatprep.subr.bf16.mxu1 (!%p112_p2), %v831_v0  ;;  %739 = vmatprep.mubr.msk.bf16.mxu1 (!%p112_p2), %vm832_vm0, %v831_v0  ;;  %s835_s17 = smov (!%p112_p2), 88   ;;  %s836_s18 = smov (!%p112_p2), 120   ;;  %vm633_vm6 = vcmask (!%p112_p2), 257216  }
   0x8   : > { %s837_s19 = smov (!%p112_p2), 80   ;;  %s838_s20 = smov (!%p112_p2), 112  }
   0x9   : > { %s839_s21 = smov (!%p112_p2), 72   ;;  %s840_s22 = smov (!%p112_p2), 104  }
   0xa   : > { %s841_s25 = smov (!%p112_p2), 56   ;;  %s842_s26 = smov (!%p112_p2), 48  }
   0xb   : > { %s843_s27 = smov (!%p112_p2), 40   ;;  %s844_s3 = smov (!%p112_p2), 8  }
   0xc   : > { %s845_s4 = smov (!%p112_p2), 16   ;;  %s846_s5 = smov (!%p112_p2), 24  }
   0xd   : > { %s971_s10 = smov (!%p131_p3, %s688_s10), 1 }
   0xe   : > { %s693_s11 = sshll.u32 %s971_s10, 2 }
   0xf   : > { %s134_s14 = scalar_lea.vmem %s967_s0, %s693_s11  ;;  %s958_s30 = scalar_lea.vmem %s969_s2, %s693_s11 }
  0x10   : > { %v141_v1 = vld [vmem:[%s134_s14] sm:$0xf] }
  0x11   : > { %v695_v2 = vcombine.low %v141_v1, %v141_v1  ;;  %v804_v5 = vld [vmem:[%s134_s14] ss:$0 sps:$4 sm:$0xff]  }
  0x12   : > { %v889_v6 = vld [vmem:[%s134_s14] ss:$0 sps:$4 sm:$0xff]  }
  0x13   : > { %145 = vrot.lane.b32.xlu0 %v695_v2, %s833_s15  ;;  %206 = vrot.lane.b32.xlu1 %v695_v2, %s834_s16  ;;  %v893_v7 = vld [vmem:[%s134_s14] ss:$0 sps:$4 sm:$0xff]  }
  0x17   : > { %266 = vrot.lane.b32.xlu1 %v804_v5, %s835_s17 }
  0x1b   : > { %264 = vrot.lane.b32.xlu1 %v804_v5, %s836_s18 }
  0x1f   : > { %391 = vrot.lane.b32.xlu1 %v889_v6, %s837_s19 }
  0x23   : > { %389 = vrot.lane.b32.xlu1 %v889_v6, %s838_s20 }
  0x27   : > { %516 = vrot.lane.b32.xlu1 %v893_v7, %s839_s21 }
  0x2b   : > { %514 = vrot.lane.b32.xlu1 %v893_v7, %s840_s22 }
  0x85   : > { %v146_v3 = vpop.permute.xlu0 %145  ;;  %v207_v16 = vpop.permute.xlu1 %206 }
  0x86   : > { %v152_v4 = vsel %vm147_vm1, %v146_v3, 0  ;;  %v213_v17 = vsel %vm211_vm2, %v207_v16, 0 }
  0x87   : > { %732 = vmatpush3.bf16.xpose.msra.mxu0 %v152_v4  ;;  %738 = vmatpush3.bf16.msra.mxu1 %v213_v17 }
  0x88   : > { %749 = vmatprep.subr.bf16.mxu0 %v831_v0  ;;  %743 = vmatprep.subr.bf16.mxu1 %v831_v0 }
  0x89   : > { %v267_v21 = vpop.permute.xlu1 %266 }
  0x8a   : > { %v272_v24 = vsel %vm147_vm1, %v267_v21, 0 }
  0x8d   : > { %v265_v22 = vpop.permute.xlu1 %264 }
  0x8e   : > { %734 = vmatmul.mubr.msk.bf16.vlgmr.msra.gmra.mrb[0].mxu0 %vm147_vm1, %v141_v1 }
  0x8f   : > { %751 = vmatprep.mubr.msk.bf16.mxu0 %vm832_vm0, %v831_v0 }
  0x91   : > { %v392_v26 = vpop.permute.xlu1 %391 }
  0x92   : > { %v397_v28 = vsel %vm147_vm1, %v392_v26, 0 }
  0x95   : > { %v390_v27 = vpop.permute.xlu1 %389 }
  0x99   : > { %v517_v29 = vpop.permute.xlu1 %516 }
  0x9a   : > { %v522_v30 = vsel %vm147_vm1, %v517_v29, 0 }
  0x9d   : > { %v515_v31 = vpop.permute.xlu1 %514 }
 0x161   : > { %v188_v8 = vpop.f32.mrb[0].mxu0 }
 0x162   : > { %v194_v10 = vmul.f32 0.35355338, %v188_v8  ;;  %v735_v11 = vpop.f32.mrb[1].mxu0 }
 0x163   : > { %v191_v12 = vpop.f32.mrb[2].mxu0 }
 0x164   : > { %v736_v13 = vpop.f32.mrb[3].mxu0  ;;  %v195_v14 = vadd.f32 %v194_v10, %v900_v9 }
 0x166   : > { %v196_v15 = vsel %vm147_vm1, %v195_v14, -inf }
 0x167   : > { %197 = vmax.xlane.f32.xlu0 %v196_v15 }
 0x17d   : > { %326 = vrot.lane.b32.xlu0 %v804_v5, %s841_s25 }
 0x1f4   : > { %v198_v18 = vpop.xlane.xlu0 %197 }
 0x1f5   : > { %v199_v19 = vsub.f32 %v195_v14, %v198_v18 }
 0x1f7   : > { %v200_v20 = vmul.f32 1.442695, %v199_v19 }
 0x1f8   : > { %v327_v32 = vpop.permute.xlu0 %326 }
 0x1f9   : > { %807 = vpow2.f32 %v200_v20  ;;  %v332_v33 = vsel %vm211_vm2, %v327_v32, 0 }
 0x1fa   : > { %750 = vmatpush3.bf16.msra.mxu0 %v332_v33 }
 0x1fb   : > { %761 = vmatprep.subr.bf16.mxu0 %v831_v0 }
 0x203   : > { %v906_v23 = vpop.eup %807 }
 0x204   : > { %v205_v25 = vpack.c.bf16 %v906_v23, %v906_v23  ;;  %v202_v18 = vsel %vm147_vm1, %v906_v23, 0.0 }
 0x206   : > { %740 = vmatmul.mubr.msk.bf16.vlgmr.msra.gmra.mrb[0].mxu1 %vm147_vm1, %v205_v25 }
 0x207   : > { %744 = vmatpush3.bf16.xpose.msra.mxu1 %v272_v24  ;;  %745 = vmatprep.mubr.msk.bf16.mxu1 %vm832_vm0, %v831_v0 }
 0x208   : > { %755 = vmatprep.subr.bf16.mxu1 %v831_v0 }
 0x20e   : > { %746 = vmatmul.mubr.msk.bf16.vlgmr.msra.gmra.mrb[4].mxu1 %vm147_vm1, %v265_v22 }
 0x20f   : > { %756 = vmatpush3.bf16.xpose.msra.mxu1 %v397_v28  ;;  %757 = vmatprep.mubr.msk.bf16.mxu1 %vm832_vm0, %v831_v0 }
 0x210   : > { %767 = vmatprep.subr.bf16.mxu1 %v831_v0 }
 0x216   : > { %758 = vmatmul.mubr.msk.bf16.vlgmr.msra.gmra.mrb[8].mxu1 %vm147_vm1, %v390_v27 }
 0x217   : > { %768 = vmatpush3.bf16.xpose.msra.mxu1 %v522_v30  ;;  %769 = vmatprep.mubr.msk.bf16.mxu1 %vm832_vm0, %v831_v0 }
 0x21e   : > { %770 = vmatmul.mubr.msk.bf16.vlgmr.msra.gmra.mrb[12].mxu1 %vm147_vm1, %v515_v31 }
 0x2d9   : > { %v927_v34 = vpop.f32.mrb[0].mxu1 }
 0x2da   : > { %v741_v35 = vpop.f32.mrb[1].mxu1 }
 0x2db   : > { %v252_v36 = vpop.f32.mrb[2].mxu1 }
 0x2dc   : > { %v742_v37 = vpop.f32.mrb[3].mxu1 }
 0x2e1   : > { %v308_v38 = vpop.f32.mrb[4].mxu1 }
 0x2e2   : > { %v314_v39 = vmul.f32 0.35355338, %v308_v38  ;;  %v747_v40 = vpop.f32.mrb[5].mxu1 }
 0x2e3   : > { %v311_v41 = vpop.f32.mrb[6].mxu1 }
 0x2e4   : > { %v748_v42 = vpop.f32.mrb[7].mxu1  ;;  %v315_v43 = vadd.f32 %v314_v39, %v900_v9 }
 0x2e6   : > { %v316_v44 = vsel %vm147_vm1, %v315_v43, -inf }
 0x2e7   : > { %317 = vmax.xlane.f32.xlu1 %v316_v44 }
 0x2e9   : > { %v433_v45 = vpop.f32.mrb[8].mxu1 }
 0x2ea   : > { %v439_v46 = vmul.f32 0.35355338, %v433_v45  ;;  %v759_v47 = vpop.f32.mrb[9].mxu1 }
 0x2eb   : > { %v436_v48 = vpop.f32.mrb[10].mxu1 }
 0x2ec   : > { %v760_v49 = vpop.f32.mrb[11].mxu1  ;;  %v440_v50 = vadd.f32 %v439_v46, %v900_v9 }
 0x2ee   : > { %v441_v51 = vsel %vm147_vm1, %v440_v50, -inf }
 0x2ef   : > { %442 = vmax.xlane.f32.xlu0 %v441_v51 }
 0x2f1   : > { %v558_v52 = vpop.f32.mrb[12].mxu1 }
 0x2f2   : > { %v564_v53 = vmul.f32 0.35355338, %v558_v52  ;;  %v771_v54 = vpop.f32.mrb[13].mxu1 }
 0x2f3   : > { %v561_v55 = vpop.f32.mrb[14].mxu1 }
 0x2f4   : > { %v772_v56 = vpop.f32.mrb[15].mxu1  ;;  %v565_v57 = vadd.f32 %v564_v53, %v900_v9 }
 0x2f6   : > { %v566_v58 = vsel %vm147_vm1, %v565_v57, -inf }
 0x2f7   : > { %567 = vmax.xlane.f32.xlu0 %v566_v58 }
 0x2f8   : > { %451 = vrot.lane.b32.xlu1 %v889_v6, %s842_s26 }
 0x30d   : > { %576 = vrot.lane.b32.xlu0 %v893_v7, %s843_s27 }
 0x374   : > { %v318_v59 = vpop.xlane.xlu1 %317 }
 0x375   : > { %v319_v60 = vsub.f32 %v315_v43, %v318_v59 }
 0x377   : > { %v320_v61 = vmul.f32 1.442695, %v319_v60 }
 0x378   : > { %v452_v2 = vpop.permute.xlu1 %451 }
 0x379   : > { %809 = vpow2.f32 %v320_v61  ;;  %v457_v4 = vsel %vm211_vm2, %v452_v2, 0 }
 0x37c   : > { %v443_v62 = vpop.xlane.xlu0 %442 }
 0x37d   : > { %v444_v63 = vsub.f32 %v440_v50, %v443_v62 }
 0x37f   : > { %v445_v1 = vmul.f32 1.442695, %v444_v63 }
 0x381   : > { %811 = vpow2.f32 %v445_v1 }
 0x383   : > { %v810_v3 = vpop.eup %809 }
 0x384   : > { %v568_v5 = vpop.xlane.xlu0 %567  ;;  %v322_v8 = vsel %vm147_vm1, %v810_v3, 0.0  ;;  %v325_v9 = vpack.c.bf16 %v810_v3, %v810_v3 }
 0x385   : > { %v569_v6 = vsub.f32 %v565_v57, %v568_v5  ;;  %323 = vadd.xlane.f32.xlu0 %v322_v8 }
 0x386   : > { %752 = vmatmul.mubr.msk.bf16.vlgmr.msra.gmra.mrb[4].mxu0 %vm147_vm1, %v325_v9 }
 0x387   : > { %v570_v7 = vmul.f32 1.442695, %v569_v6  ;;  %762 = vmatpush3.bf16.msra.mxu0 %v457_v4  ;;  %763 = vmatprep.mubr.msk.bf16.mxu0 %vm832_vm0, %v831_v0 }
 0x388   : > { %773 = vmatprep.subr.bf16.mxu0 %v831_v0  ;;  %v577_v10 = vpop.permute.xlu0 %576 }
 0x389   : > { %813 = vpow2.f32 %v570_v7  ;;  %v582_v12 = vsel %vm211_vm2, %v577_v10, 0 }
 0x38b   : > { %v812_v11 = vpop.eup %811 }
 0x38c   : > { %v447_v13 = vsel %vm147_vm1, %v812_v11, 0.0  ;;  %v450_v14 = vpack.c.bf16 %v812_v11, %v812_v11 }
 0x38d   : > { %448 = vadd.xlane.f32.xlu1 %v447_v13 }
 0x38e   : > { %764 = vmatmul.mubr.msk.bf16.vlgmr.msra.gmra.mrb[8].mxu0 %vm147_vm1, %v450_v14 }
 0x38f   : > { %774 = vmatpush3.bf16.msra.mxu0 %v582_v12  ;;  %775 = vmatprep.mubr.msk.bf16.mxu0 %vm832_vm0, %v831_v0 }
 0x393   : > { %v814_v15 = vpop.eup %813 }
 0x394   : > { %v572_v16 = vsel %vm147_vm1, %v814_v15, 0.0  ;;  %v575_v17 = vpack.c.bf16 %v814_v15, %v814_v15 }
 0x395   : > { %573 = vadd.xlane.f32.xlu0 %v572_v16 }
 0x396   : > { %776 = vmatmul.mubr.msk.bf16.vlgmr.msra.gmra.mrb[12].mxu0 %vm147_vm1, %v575_v17 }
 0x399   : > { %203 = vadd.xlane.f32.xlu0 %v202_v18 }
 0x412   : > { %v324_v19 = vpop.xlane.xlu0 %323 }
 0x41a   : > { %v449_v23 = vpop.xlane.xlu1 %448 }
 0x422   : > { %v574_v20 = vpop.xlane.xlu0 %573 }
 0x426   : > { %v204_v21 = vpop.xlane.xlu0 %203 }
 0x427   : > { %815 = vrcp.f32 %v204_v21 }
 0x428   : > { %817 = vrcp.f32 %v324_v19 }
 0x429   : > { %819 = vrcp.f32 %v449_v23 }
 0x42a   : > { %821 = vrcp.f32 %v574_v20 }
 0x431   : > { %v816_v22 = vpop.eup %815 }
 0x432   : > { %v256_v24 = vmul.f32 %v816_v22, %v927_v34  ;;  %v818_v25 = vpop.eup %817 }
 0x433   : > { %v820_v32 = vpop.eup %819 }
 0x434   : > { %v257_v0 = vpack.c.bf16 %v256_v24, %v256_v24  ;;  %v822_v39 = vpop.eup %821 }
 0x436   : > { %259 = vst.msk [vmem:[%s958_s30] sm:$0xf] %vm258_vm3, %v257_v0 }
 0x459   : > { %v368_v26 = vpop.f32.mrb[4].mxu0 }
 0x45a   : > { %v375_v27 = vmul.f32 %v818_v25, %v368_v26  ;;  %v753_v28 = vpop.f32.mrb[5].mxu0 }
 0x45b   : > { %v371_v29 = vpop.f32.mrb[6].mxu0 }
 0x45c   : > { %v712_v30 = vpack.c.bf16 %v375_v27, %v375_v27  ;;  %v754_v31 = vpop.f32.mrb[7].mxu0 }
 0x45e   : > { %380 = vrot.lane.b32.xlu0 %v712_v30, %s844_s3 }
 0x461   : > { %v493_v33 = vpop.f32.mrb[8].mxu0 }
 0x462   : > { %v500_v34 = vmul.f32 %v820_v32, %v493_v33  ;;  %v765_v35 = vpop.f32.mrb[9].mxu0 }
 0x463   : > { %v496_v36 = vpop.f32.mrb[10].mxu0 }
 0x464   : > { %v713_v37 = vpack.c.bf16 %v500_v34, %v500_v34  ;;  %v766_v38 = vpop.f32.mrb[11].mxu0 }
 0x466   : > { %505 = vrot.lane.b32.xlu1 %v713_v37, %s845_s4 }
 0x469   : > { %v618_v40 = vpop.f32.mrb[12].mxu0 }
 0x46a   : > { %v625_v41 = vmul.f32 %v822_v39, %v618_v40  ;;  %v777_v42 = vpop.f32.mrb[13].mxu0 }
 0x46b   : > { %v621_v43 = vpop.f32.mrb[14].mxu0 }
 0x46c   : > { %v714_v44 = vpack.c.bf16 %v625_v41, %v625_v41  ;;  %v778_v45 = vpop.f32.mrb[15].mxu0 }
 0x46e   : > { %630 = vrot.lane.b32.xlu0 %v714_v44, %s846_s5 }
 0x4d0   : > { %v381_v46 = vpop.permute.xlu0 %380 }
 0x4d1   : > { %384 = vst.msk [vmem:[%s958_s30] sm:$0xf] %vm383_vm4, %v381_v46 }
 0x4d8   : > { %v506_v47 = vpop.permute.xlu1 %505 }
 0x4d9   : > { %509 = vst.msk [vmem:[%s958_s30] sm:$0xf] %vm508_vm5, %v506_v47 }
 0x4e0   : > { %v631_v48 = vpop.permute.xlu0 %630 }
 0x4e1   : > { %634 = vst.msk [vmem:[%s958_s30] sm:$0xf] %vm633_vm6, %v631_v48 }
 0x4e2 PF: > { %s12_s9 = sadd.s32 1, %s829_s9  }
 0x4e3   : > { %p9_p4 = scmp.ge.s32.totalorder %s12_s9, 4  }
 0x4e5   :  { %11 = sbr.rel (!%p9_p4) target bundleno = 1 (0x1), region = 58 }

// kernel: residual_attention_block.8
= control target key start
LH: loop header
LB: loop body
LE: loop exit
PB: predicated region body
PF: predicated region fallthrough
CT: control target
= control target key end

     0   :  { %vm23_vm0 = vcmask 261120   ;;  %v201_v15 = vmov 0.0   ;;  %vm202_vm1 = vmmov 0   ;;  %s262_s0 = inlined_call_operand.vmem [shape: f32[2,8,32], index: 0, kind: input, shape index: {}]   ;;  %s263_s3 = inlined_call_operand.vmem [shape: bf16[32,128], index: 3, kind: input, shape index: {}]   ;;  %s264_s1 = inlined_call_operand.vmem [shape: f32[1,32], index: 1, kind: input, shape index: {}]   ;;  %s265_s2 = inlined_call_operand.vmem [shape: f32[1,32], index: 2, kind: input, shape index: {}]   ;;  %s266_s4 = inlined_call_operand.vmem [shape: f32[1,128], index: 4, kind: input, shape index: {}]   ;;  %s267_s5 = inlined_call_operand.vmem [shape: bf16[2,8,128], index: 5, kind: output, shape index: {}]  }
   0x1   :  { %v21_v0 = vld [vmem:[%s262_s0] sm:$0xff]  ;;  %v22_v1 = vld [vmem:[%s262_s0 + $0x8] sm:$0xff]  ;;  %177 = vmatprep.subr.bf16.mxu0 %v201_v15  ;;  %181 = vmatprep.mubr.msk.bf16.mxu0 %vm202_vm1, %v201_v15 }
   0x2   :  { %v24_v2 = vsel %vm23_vm0, %v21_v0, 0.0  ;;  %v27_v3 = vsel %vm23_vm0, %v22_v1, 0.0  ;;  %v187_v14 = vld [vmem:[%s263_s3] sm:$0xff]   ;;  %v188_v16 = vld [vmem:[%s263_s3 + $0x8] sm:$0xff]  }
   0x3   :  { %25 = vadd.xlane.f32.xlu0 %v24_v2  ;;  %178 = vmatpush3.bf16.msra.mxu0 %v187_v14  ;;  %v161_v25 = vld [vmem:[%s264_s1] ss:$0 sm:$0xff] }
   0x4   :  { %179 = vmatprep.subr.bf16.mxu0 %v201_v15  ;;  %v162_v29 = vld [vmem:[%s265_s2] ss:$0 sm:$0xff] }
   0x5   :  { %v163_v34 = vld [vmem:[%s266_s4] ss:$0 sm:$0xff] }
   0x7   :  { %28 = vadd.xlane.f32.xlu0 %v27_v3  ;;  %180 = vmatpush3.bf16.msra.mxu0 %v188_v16 }
  0x90   :  { %v26_v4 = vpop.xlane.xlu0 %25 }
  0x91   :  { %v31_v5 = vmul.f32 0.03125, %v26_v4 }
  0x93   :  { %v33_v6 = vsub.f32 %v21_v0, %v31_v5 }
  0x94   :  { %v29_v7 = vpop.xlane.xlu0 %28 }
  0x95   :  { %v32_v8 = vmul.f32 0.03125, %v29_v7  ;;  %v35_v9 = vmul.f32 %v33_v6, %v33_v6 }
  0x97   :  { %v34_v10 = vsub.f32 %v22_v1, %v32_v8  ;;  %v37_v11 = vsel %vm23_vm0, %v35_v9, 0.0 }
  0x98   :  { %38 = vadd.xlane.f32.xlu1 %v37_v11 }
  0x99   :  { %v36_v12 = vmul.f32 %v34_v10, %v34_v10 }
  0x9b   :  { %v40_v13 = vsel %vm23_vm0, %v36_v12, 0.0 }
  0x9c   :  { %41 = vadd.xlane.f32.xlu1 %v40_v13 }
 0x125   :  { %v39_v17 = vpop.xlane.xlu1 %38 }
 0x126   :  { %v43_v18 = vmul.f32 0.03125, %v39_v17 }
 0x128   :  { %v45_v19 = vadd.f32 1e-05, %v43_v18 }
 0x129   :  { %v42_v20 = vpop.xlane.xlu1 %41 }
 0x12a   :  { %189 = vrsqrt.f32 %v45_v19  ;;  %v44_v21 = vmul.f32 0.03125, %v42_v20 }
 0x12c   :  { %v46_v22 = vadd.f32 1e-05, %v44_v21 }
 0x12e   :  { %191 = vrsqrt.f32 %v46_v22 }
 0x134   :  { %v190_v23 = vpop.eup %189 }
 0x135   :  { %v49_v24 = vmul.f32 %v190_v23, %v33_v6 }
 0x137   :  { %v58_v28 = vmul.f32 %v161_v25, %v49_v24 }
 0x138   :  { %v192_v26 = vpop.eup %191 }
 0x139   :  { %v50_v27 = vmul.f32 %v192_v26, %v34_v10  ;;  %v67_v31 = vadd.f32 %v162_v29, %v58_v28 }
 0x13b   :  { %v59_v30 = vmul.f32 %v161_v25, %v50_v27 }
 0x13d   :  { %v68_v32 = vadd.f32 %v162_v29, %v59_v30 }
 0x13f   :  { %v69_v33 = vpack.c.bf16 %v68_v32, %v67_v31 }
 0x141   :  { %182 = vmatmul.mubr.msk.bf16.vlgmr.msra.gmra.mrb[0].mxu0 %vm23_vm0, %v69_v33 }
 0x214   :  { %v130_v35 = vpop.f32.mrb[0].mxu0 }
 0x215   :  { %v131_v36 = vadd.f32 %v163_v34, %v130_v35  ;;  %v183_v37 = vpop.f32.mrb[1].mxu0 }
 0x216   :  { %v133_v38 = vpop.f32.mrb[2].mxu0 }
 0x217   :  { %v167_v39 = vmul.f32 -1.702, %v131_v36  ;;  %v134_v40 = vadd.f32 %v163_v34, %v133_v38  ;;  %v184_v41 = vpop.f32.mrb[3].mxu0 }
 0x219   :  { %v141_v42 = vmul.f32 1.442695, %v167_v39  ;;  %v168_v43 = vmul.f32 -1.702, %v134_v40 }
 0x21b   :  { %193 = vpow2.f32 %v141_v42  ;;  %v143_v44 = vmul.f32 1.442695, %v168_v43 }
 0x21d   :  { %195 = vpow2.f32 %v143_v44 }
 0x225   :  { %v194_v45 = vpop.eup %193 }
 0x226   :  { %v145_v46 = vadd.f32 1.0, %v194_v45 }
 0x227   :  { %v196_v47 = vpop.eup %195 }
 0x228   :  { %197 = vrcp.f32 %v145_v46  ;;  %v146_v48 = vadd.f32 1.0, %v196_v47 }
 0x22a   :  { %199 = vrcp.f32 %v146_v48 }
 0x232   :  { %v198_v49 = vpop.eup %197 }
 0x233   :  { %v151_v51 = vmul.f32 %v198_v49, %v131_v36 }
 0x234   :  { %v200_v50 = vpop.eup %199 }
 0x235   :  { %v152_v52 = vmul.f32 %v200_v50, %v134_v40 }
 0x237   :  { %v172_v53 = vpack.c.bf16 %v152_v52, %v151_v51 }
 0x239   :  { %173 = vst [vmem:[%s267_s5] sm:$0xff] %v172_v53  }

// kernel: residual_attention_block.9
= control target key start
LH: loop header
LB: loop body
LE: loop exit
PB: predicated region body
PF: predicated region fallthrough
CT: control target
= control target key end

     0   :  { %v201_v0 = vmov 0.0   ;;  %vm202_vm0 = vmmov 0   ;;  %vm144_vm1 = vcmask 261120   ;;  %s270_s1 = inlined_call_operand.vmem [shape: bf16[128,32], index: 1, kind: input, shape index: {}]   ;;  %s271_s0 = inlined_call_operand.vmem [shape: bf16[2,8,128], index: 0, kind: input, shape index: {}]   ;;  %s272_s2 = inlined_call_operand.vmem [shape: f32[1,32], index: 2, kind: input, shape index: {}]   ;;  %s273_s3 = inlined_call_operand.vmem [shape: f32[2,8,32], index: 3, kind: input, shape index: {}, may-alias: {3,4}]   ;;  %s274_s4 = inlined_call_operand.vmem [shape: f32[2,8,32], index: 4, kind: output, shape index: {}, may-alias: {3,4}]  }
   0x1   :  { %170 = vmatprep.subr.bf16.mxu0 %v201_v0  ;;  %v192_v1 = vld [vmem:[%s270_s1] sm:$0xff]   ;;  %186 = vmatprep.mubr.msk.bf16.mxu0 %vm202_vm0, %v201_v0  ;;  %v193_v2 = vld [vmem:[%s270_s1 + $0x8] sm:$0xff]   ;;  %v194_v3 = vld [vmem:[%s270_s1 + $0x10] sm:$0xff]  }
   0x2   :  { %171 = vmatpush3.bf16.msra.mxu0 %v192_v1  ;;  %v195_v4 = vld [vmem:[%s270_s1 + $0x18] sm:$0xff]   ;;  %v196_v5 = vld [vmem:[%s270_s1 + $0x20] sm:$0xff]   ;;  %v197_v6 = vld [vmem:[%s270_s1 + $0x28] sm:$0xff]  }
   0x3   :  { %172 = vmatprep.subr.bf16.mxu0 %v201_v0  ;;  %v198_v7 = vld [vmem:[%s270_s1 + $0x30] sm:$0xff]   ;;  %v199_v8 = vld [vmem:[%s270_s1 + $0x38] sm:$0xff]   ;;  %v200_v9 = vld [vmem:[%s271_s0] sm:$0xff]  }
   0x4   :  { %v160_v10 = vld [vmem:[%s272_s2] ss:$0 sm:$0xff]  ;;  %v141_v16 = vld [vmem:[%s273_s3 + $0x8] sm:$0xff] }
   0x5   :  { %v140_v12 = vld [vmem:[%s273_s3] sm:$0xff] }
   0x6   :  { %173 = vmatpush3.bf16.msra.mxu0 %v193_v2 }
   0x7   :  { %174 = vmatprep.subr.bf16.mxu0 %v201_v0 }
   0xa   :  { %175 = vmatpush3.bf16.msra.mxu0 %v194_v3 }
   0xb   :  { %176 = vmatprep.subr.bf16.mxu0 %v201_v0 }
   0xe   :  { %177 = vmatpush3.bf16.msra.mxu0 %v195_v4 }
   0xf   :  { %178 = vmatprep.subr.bf16.mxu0 %v201_v0 }
  0x12   :  { %179 = vmatpush3.bf16.msra.mxu0 %v196_v5 }
  0x13   :  { %180 = vmatprep.subr.bf16.mxu0 %v201_v0 }
  0x16   :  { %181 = vmatpush3.bf16.msra.mxu0 %v197_v6 }
  0x17   :  { %182 = vmatprep.subr.bf16.mxu0 %v201_v0 }
  0x1a   :  { %183 = vmatpush3.bf16.msra.mxu0 %v198_v7 }
  0x1b   :  { %184 = vmatprep.subr.bf16.mxu0 %v201_v0 }
  0x1e   :  { %185 = vmatpush3.bf16.msra.mxu0 %v199_v8 }
  0x21   :  { %187 = vmatmul.mubr.bf16.vlgmr.msra.gmra.mrb[0].mxu0 %v200_v9 }
  0xf4   :  { %v124_v11 = vpop.f32.mrb[0].mxu0 }
  0xf5   :  { %v138_v13 = vadd.f32 %v160_v10, %v124_v11  ;;  %v188_v14 = vpop.f32.mrb[1].mxu0 }
  0xf6   :  { %v127_v15 = vpop.f32.mrb[2].mxu0 }
  0xf7   :  { %v142_v17 = vadd.f32 %v140_v12, %v138_v13  ;;  %v139_v18 = vadd.f32 %v160_v10, %v127_v15  ;;  %v189_v19 = vpop.f32.mrb[3].mxu0 }
  0xf9   :  { %145 = vst.msk [vmem:[%s274_s4] sm:$0xff] %vm144_vm1, %v142_v17  ;;  %v143_v20 = vadd.f32 %v141_v16, %v139_v18 }
  0xfb   :  { %146 = vst.msk [vmem:[%s274_s4 + $0x8] sm:$0xff] %vm144_vm1, %v143_v20 }

</bundles_post_ra>
